<compile_context>
chip_gen: v6e
topology: v6e:2x2x1
jax: 0.10.0
libtpu: 0.0.40
codegen_flags: <defaults>
</compile_context>

<pallas_src>
import functools

import jax
import jax.numpy as jnp
from jax.experimental import pallas as pl
from jax.experimental.pallas import tpu as pltpu

VMEM = pltpu.MemorySpace.VMEM
BN_EPS = 1e-5
POOL_K = 441
POOL_CHUNK_ROWS = 128   # pooling-window rows processed per in-kernel step


# ------------------------------ fused kernel ---------------------------------

def fused_forward_kernel(xw_ref, sp_ref, w2_ref, w3_ref, wp_ref, wc_ref,
                         o_ref, pool_s, y1p_s, y2p_s, *, B, L2, L3):
    f32 = jnp.float32
    L4 = L3
    S1 = L2 + 8                  # conv2 padded time length per batch (pad=4)
    S2 = L3 + 4                  # conv3 padded time length per batch (pad=2)
    BL2, BL3, BL4 = B * L2, B * L3, B * L4
    n_rows = B * L2 * 10         # number of 441-wide pooling windows

    # ---- packed small params: rows 0-8 = b1,g1,be1,b2,g2,be2,b3,bp,bc;
    #      rows 9-18 = conv1 weight (k, c_out) --------------------------------
    b1  = sp_ref[0:1, 0:32]
    g1  = sp_ref[1:2, 0:32]
    be1 = sp_ref[2:3, 0:32]
    b2  = sp_ref[3:4, 0:64]
    g2  = sp_ref[4:5, 0:64]
    be2 = sp_ref[5:6, 0:64]
    b3  = sp_ref[6:7, 0:32]
    bp  = sp_ref[7:8, 0:256]
    bc  = sp_ref[8:9, 0:10]

    def bn_relu(z, g, beta):
        # Training-mode BatchNorm1d: global (B*T) batch stats, biased variance,
        # single-pass (E[x^2] - mu^2).
        mu = jnp.mean(z, axis=0, keepdims=True)
        var = jnp.mean(z * z, axis=0, keepdims=True) - mu * mu
        return jnp.maximum((z - mu) * jax.lax.rsqrt(var + BN_EPS) * g + beta, 0.0)

    # ---- Stage 0: abs + MaxPool1d(441, 441) ---------------------------------
    # Two-stage max: elementwise (VPU) max over the 128-lane chunks, then one
    # narrow cross-lane (XLU) reduce.  Chunked over rows to bound live vregs.
    def pool_rows(r0, rc):
        n_full = POOL_K // 128
        m = jnp.abs(xw_ref[r0:r0 + rc, 0:128])
        for c in range(1, n_full):
            m = jnp.maximum(m, jnp.abs(xw_ref[r0:r0 + rc, c * 128:(c + 1) * 128]))
        red = jnp.max(m, axis=-1, keepdims=True)
        rem = POOL_K % 128
        if rem:
            tail = jnp.abs(xw_ref[r0:r0 + rc, n_full * 128:POOL_K])
            red = jnp.maximum(red, jnp.max(tail, axis=-1, keepdims=True))
        return red

    r0 = 0
    while r0 < n_rows:                       # static Python loop
        rc = min(POOL_CHUNK_ROWS, n_rows - r0)
        pool_s[r0:r0 + rc, :] = pool_rows(r0, rc)
        r0 += rc

    # ---- Conv1d(1->32, k=10, s=10): 10 tap broadcast-MACs -------------------
    # Pooled value for (b, t, k) sits at row b*L2*10 + t*10 + k, so tap k is a
    # single stride-10 sublane read spanning all batches (no relayout needed).
    z1 = jnp.zeros((BL2, 32), f32)
    for k in range(10):
        col = pool_s[pl.ds(k, BL2, stride=10), :]            # (B*L2, 1)
        z1 = z1 + col * sp_ref[9 + k:10 + k, 0:32]           # tap weight (1, 32)
    y1 = bn_relu(z1 + b1, g1, be1)                           # (B*L2, 32)

    # Scatter into per-batch padded scratch; zero only the 4-row pad halos.
    for b in range(B):
        y1p_s[b * S1:b * S1 + 4, :] = jnp.zeros((4, 32), f32)
        y1p_s[b * S1 + 4:b * S1 + 4 + L2, :] = y1[b * L2:(b + 1) * L2, :]
        y1p_s[b * S1 + 4 + L2:(b + 1) * S1, :] = jnp.zeros((4, 32), f32)

    # ---- Conv1d(32->64, k=12, s=4, p=4): tap accumulation -------------------
    # One (B*L3, 32) @ (32, 64) dot per tap; operands come from stride-4
    # sublane reads, all batches batched into each dot.  No im2col lane concat.
    z2 = jnp.zeros((BL3, 64), f32)
    for k in range(12):
        parts = [y1p_s[pl.ds(b * S1 + k, L3, stride=4), :] for b in range(B)]
        lhs = parts[0] if B == 1 else jnp.concatenate(parts, axis=0)
        z2 = z2 + jnp.dot(lhs, w2_ref[k * 32:(k + 1) * 32, :],
                          preferred_element_type=f32)
    y2 = bn_relu(z2 + b2, g2, be2)                           # (B*L3, 64)

    for b in range(B):
        y2p_s[b * S2:b * S2 + 2, :] = jnp.zeros((2, 64), f32)
        y2p_s[b * S2 + 2:b * S2 + 2 + L3, :] = y2[b * L3:(b + 1) * L3, :]
        y2p_s[b * S2 + 2 + L3:(b + 1) * S2, :] = jnp.zeros((2, 64), f32)

    # ---- Conv1d(64->32, k=5, s=1, p=2): tap accumulation ---------------------
    z3 = jnp.zeros((BL4, 32), f32)
    for k in range(5):
        parts = [y2p_s[b * S2 + k:b * S2 + k + L4, :] for b in range(B)]
        lhs = parts[0] if B == 1 else jnp.concatenate(parts, axis=0)
        z3 = z3 + jnp.dot(lhs, w3_ref[k * 64:(k + 1) * 64, :],
                          preferred_element_type=f32)
    z3 = z3 + b3                                             # (B*L4, 32)

    # ---- Linear(32->256) -> mean pool over time -> Linear(256->10) ----------
    h = jnp.dot(z3, wp_ref[...], preferred_element_type=f32) + bp   # (B*L4, 256)
    feats = [jnp.mean(h[b * L4:(b + 1) * L4, :], axis=0, keepdims=True)
             for b in range(B)]
    pooled_feat = feats[0] if B == 1 else jnp.concatenate(feats, axis=0)  # (B,256)
    o_ref[...] = jnp.dot(pooled_feat, wc_ref[...],
                         preferred_element_type=f32) + bc             # (B, 10)


# --------------------------------- wrappers ----------------------------------

def init_params(key):
    ks = jax.random.split(key, 10)

    def nrm(k, shape, fan_in):
        return jax.random.normal(k, shape, jnp.float32) / jnp.sqrt(float(fan_in))

    return {
        "w1": nrm(ks[0], (32, 1, 10), 10),   "b1": nrm(ks[1], (32,), 10),
        "g1": jnp.ones((32,), jnp.float32),  "be1": jnp.zeros((32,), jnp.float32),
        "w2": nrm(ks[2], (64, 32, 12), 384), "b2": nrm(ks[3], (64,), 384),
        "g2": jnp.ones((64,), jnp.float32),  "be2": jnp.zeros((64,), jnp.float32),
        "w3": nrm(ks[4], (32, 64, 5), 320),  "b3": nrm(ks[5], (32,), 320),
        "wp": nrm(ks[6], (256, 32), 32),     "bp": nrm(ks[7], (256,), 32),
        "wc": nrm(ks[8], (10, 256), 256),    "bc": nrm(ks[9], (10,), 256),
    }


def prepare_params(params):
    """One-time layout prep (hoisted out of forward): PyTorch conv weights
    (C_out, C_in, K) -> tap-major (K*C_in, C_out); Linear weights -> (in, out);
    all 1-D params plus the tiny conv1 weight packed into a single (19, 256)
    buffer so the kernel takes 6 inputs instead of 16."""
    w1f = params["w1"].transpose(2, 1, 0).reshape(10, 32)         # (k, c_out)
    w2f = params["w2"].transpose(2, 1, 0).reshape(12 * 32, 64)    # (k*c_in, c_out)
    w3f = params["w3"].transpose(2, 1, 0).reshape(5 * 64, 32)
    wp = params["wp"].T                                           # (32, 256)
    wc = params["wc"].T                                           # (256, 10)

    def row(v):
        return jnp.pad(v, (0, 256 - v.shape[0]))[None, :]

    sp = jnp.concatenate(
        [row(params["b1"]), row(params["g1"]), row(params["be1"]),
         row(params["b2"]), row(params["g2"]), row(params["be2"]),
         row(params["b3"]), row(params["bp"]), row(params["bc"]),
         jnp.pad(w1f, ((0, 0), (0, 256 - 32)))], axis=0)          # (19, 256)
    return {"sp": sp, "w2f": w2f, "w3f": w3f, "wp": wp, "wc": wc}


def forward(prepped, x):
    B, L = x.shape
    L1 = L // POOL_K
    L2 = L1 // 10                        # conv1 output length
    L3 = (L2 + 2 * 4 - 12) // 4 + 1      # conv2 output length (== conv3 length)
    n_rows = B * L2 * 10
    # Contiguous reshape: rows are the 441-wide pooling windows in (b, t) order.
    xw = x[:, :L2 * 10 * POOL_K].reshape(n_rows, POOL_K)

    kern = functools.partial(fused_forward_kernel, B=B, L2=L2, L3=L3)
    return pl.pallas_call(
        kern,
        out_shape=jax.ShapeDtypeStruct((B, 10), jnp.float32),
        in_specs=[pl.BlockSpec(memory_space=VMEM)] * 6,
        out_specs=pl.BlockSpec(memory_space=VMEM),
        scratch_shapes=[pltpu.VMEM((n_rows, 1), jnp.float32),          # pooled
                        pltpu.VMEM((B * (L2 + 8), 32), jnp.float32),   # padded y1
                        pltpu.VMEM((B * (L3 + 4), 64), jnp.float32)],  # padded y2
        compiler_params=pltpu.CompilerParams(vmem_limit_bytes=32 * 1024 * 1024),
    )(xw, prepped["sp"], prepped["w2f"], prepped["w3f"],
      prepped["wp"], prepped["wc"])


# ---------------------------- pure-JAX reference ------------------------------

def reference(params, x):
    B, L = x.shape
    L1 = L // POOL_K
    pooled = jnp.max(jnp.abs(x)[:, None, : L1 * POOL_K].reshape(B, 1, L1, POOL_K),
                     axis=-1)

    def conv1d(x, w, b, s, p):
        y = jax.lax.conv_general_dilated(
            x, w, window_strides=(s,), padding=[(p, p)],
            dimension_numbers=("NCH", "OIH", "NCH"))
        return y + b[None, :, None]

    def bn_relu(y, g, be):
        mu = jnp.mean(y, axis=(0, 2), keepdims=True)
        var = jnp.mean(jnp.square(y - mu), axis=(0, 2), keepdims=True)
        y = (y - mu) / jnp.sqrt(var + BN_EPS)
        return jnp.maximum(y * g[None, :, None] + be[None, :, None], 0.0)

    y = bn_relu(conv1d(pooled, params["w1"], params["b1"], 10, 0),
                params["g1"], params["be1"])
    y = bn_relu(conv1d(y, params["w2"], params["b2"], 4, 4),
                params["g2"], params["be2"])
    y = conv1d(y, params["w3"], params["b3"], 1, 2)
    h = y.transpose(0, 2, 1) @ params["wp"].T + params["bp"]
    return jnp.mean(h, axis=1) @ params["wc"].T + params["bc"]


if __name__ == "__main__":
    key = jax.random.PRNGKey(0)
    kx, kp = jax.random.split(key)

    B = 2
    L = 80 * 441   # 35280 samples -> 80 pooled steps -> seq len 2 after the stack
    x = jax.random.normal(kx, (B, L), jnp.float32)
    params = init_params(kp)
    prepped = prepare_params(params)          # one-time layout prep (hoisted)

    logits = jax.block_until_ready(jax.jit(forward)(prepped, x))
    assert logits.shape == (B, 10)

    with jax.default_matmul_precision("highest"):
        ref = jax.block_until_ready(reference(params, x))
    max_err = float(jnp.max(jnp.abs(logits - ref)))
    assert max_err < 1e-2, f"mismatch vs reference: {max_err}"

    print("KERNEL_OK")
</pallas_src>

<mosaic_0001>
module attributes {stable_mosaic.version = 11 : i64} {
  func.func @fused_forward_kernel(%arg0: memref<160x441xf32, #tpu.memory_space<vmem>>, %arg1: memref<19x256xf32, #tpu.memory_space<vmem>>, %arg2: memref<384x64xf32, #tpu.memory_space<vmem>>, %arg3: memref<320x32xf32, #tpu.memory_space<vmem>>, %arg4: memref<32x256xf32, #tpu.memory_space<vmem>>, %arg5: memref<256x10xf32, #tpu.memory_space<vmem>>, %arg6: memref<2x10xf32, #tpu.memory_space<vmem>>, %arg7: memref<160x1xf32, #tpu.memory_space<vmem>>, %arg8: memref<32x32xf32, #tpu.memory_space<vmem>>, %arg9: memref<12x64xf32, #tpu.memory_space<vmem>>) attributes {dimension_semantics = [], scalar_prefetch = 0 : i64, scratch_operands = 3 : i64, tpu.core_type = #tpu.core_type<tc>} {
    %c0 = arith.constant 0 : index
    %c0_0 = arith.constant 0 : index
    %0 = vector.load %arg1[%c0, %c0_0] : memref<19x256xf32, #tpu.memory_space<vmem>>, vector<1x32xf32>
    %c1 = arith.constant 1 : index
    %c0_1 = arith.constant 0 : index
    %1 = vector.load %arg1[%c1, %c0_1] : memref<19x256xf32, #tpu.memory_space<vmem>>, vector<1x32xf32>
    %c2 = arith.constant 2 : index
    %c0_2 = arith.constant 0 : index
    %2 = vector.load %arg1[%c2, %c0_2] : memref<19x256xf32, #tpu.memory_space<vmem>>, vector<1x32xf32>
    %c3 = arith.constant 3 : index
    %c0_3 = arith.constant 0 : index
    %3 = vector.load %arg1[%c3, %c0_3] : memref<19x256xf32, #tpu.memory_space<vmem>>, vector<1x64xf32>
    %c4 = arith.constant 4 : index
    %c0_4 = arith.constant 0 : index
    %4 = vector.load %arg1[%c4, %c0_4] : memref<19x256xf32, #tpu.memory_space<vmem>>, vector<1x64xf32>
    %c5 = arith.constant 5 : index
    %c0_5 = arith.constant 0 : index
    %5 = vector.load %arg1[%c5, %c0_5] : memref<19x256xf32, #tpu.memory_space<vmem>>, vector<1x64xf32>
    %c6 = arith.constant 6 : index
    %c0_6 = arith.constant 0 : index
    %6 = vector.load %arg1[%c6, %c0_6] : memref<19x256xf32, #tpu.memory_space<vmem>>, vector<1x32xf32>
    %c7 = arith.constant 7 : index
    %c0_7 = arith.constant 0 : index
    %7 = vector.load %arg1[%c7, %c0_7] : memref<19x256xf32, #tpu.memory_space<vmem>>, vector<1x256xf32>
    %c8 = arith.constant 8 : index
    %c0_8 = arith.constant 0 : index
    %8 = vector.load %arg1[%c8, %c0_8] : memref<19x256xf32, #tpu.memory_space<vmem>>, vector<1x10xf32>
    %c0_9 = arith.constant 0 : index
    %c0_10 = arith.constant 0 : index
    %9 = vector.load %arg0[%c0_9, %c0_10] : memref<160x441xf32, #tpu.memory_space<vmem>>, vector<128x128xf32>
    %10 = math.absf %9 : vector<128x128xf32>
    %c0_11 = arith.constant 0 : index
    %c128 = arith.constant 128 : index
    %11 = vector.load %arg0[%c0_11, %c128] : memref<160x441xf32, #tpu.memory_space<vmem>>, vector<128x128xf32>
    %12 = math.absf %11 : vector<128x128xf32>
    %13 = arith.maximumf %10, %12 : vector<128x128xf32>
    %c0_12 = arith.constant 0 : index
    %c256 = arith.constant 256 : index
    %14 = vector.load %arg0[%c0_12, %c256] : memref<160x441xf32, #tpu.memory_space<vmem>>, vector<128x128xf32>
    %15 = math.absf %14 : vector<128x128xf32>
    %16 = arith.maximumf %13, %15 : vector<128x128xf32>
    %cst = arith.constant dense<0xFF800000> : vector<128xf32>
    %17 = vector.multi_reduction <maximumf>, %16, %cst [1] : vector<128x128xf32> to vector<128xf32>
    %18 = vector.shape_cast %17 : vector<128xf32> to vector<128x1xf32>
    %c0_13 = arith.constant 0 : index
    %c384 = arith.constant 384 : index
    %19 = vector.load %arg0[%c0_13, %c384] : memref<160x441xf32, #tpu.memory_space<vmem>>, vector<128x57xf32>
    %20 = math.absf %19 : vector<128x57xf32>
    %cst_14 = arith.constant dense<0xFF800000> : vector<128xf32>
    %21 = vector.multi_reduction <maximumf>, %20, %cst_14 [1] : vector<128x57xf32> to vector<128xf32>
    %22 = vector.shape_cast %21 : vector<128xf32> to vector<128x1xf32>
    %23 = arith.maximumf %18, %22 : vector<128x1xf32>
    %c0_15 = arith.constant 0 : index
    %c0_16 = arith.constant 0 : index
    %24 = vector.load %arg7[%c0_15, %c0_16] : memref<160x1xf32, #tpu.memory_space<vmem>>, vector<128x1xf32>
    tpu.vector_store %arg7[%c0_15, %c0_16], %23 {strides = array<i32>} : memref<160x1xf32, #tpu.memory_space<vmem>>, vector<128x1xf32>,
    %c128_17 = arith.constant 128 : index
    %c0_18 = arith.constant 0 : index
    %25 = vector.load %arg0[%c128_17, %c0_18] : memref<160x441xf32, #tpu.memory_space<vmem>>, vector<32x128xf32>
    %26 = math.absf %25 : vector<32x128xf32>
    %c128_19 = arith.constant 128 : index
    %c128_20 = arith.constant 128 : index
    %27 = vector.load %arg0[%c128_19, %c128_20] : memref<160x441xf32, #tpu.memory_space<vmem>>, vector<32x128xf32>
    %28 = math.absf %27 : vector<32x128xf32>
    %29 = arith.maximumf %26, %28 : vector<32x128xf32>
    %c128_21 = arith.constant 128 : index
    %c256_22 = arith.constant 256 : index
    %30 = vector.load %arg0[%c128_21, %c256_22] : memref<160x441xf32, #tpu.memory_space<vmem>>, vector<32x128xf32>
    %31 = math.absf %30 : vector<32x128xf32>
    %32 = arith.maximumf %29, %31 : vector<32x128xf32>
    %cst_23 = arith.constant dense<0xFF800000> : vector<32xf32>
    %33 = vector.multi_reduction <maximumf>, %32, %cst_23 [1] : vector<32x128xf32> to vector<32xf32>
    %34 = vector.shape_cast %33 : vector<32xf32> to vector<32x1xf32>
    %c128_24 = arith.constant 128 : index
    %c384_25 = arith.constant 384 : index
    %35 = vector.load %arg0[%c128_24, %c384_25] : memref<160x441xf32, #tpu.memory_space<vmem>>, vector<32x57xf32>
    %36 = math.absf %35 : vector<32x57xf32>
    %cst_26 = arith.constant dense<0xFF800000> : vector<32xf32>
    %37 = vector.multi_reduction <maximumf>, %36, %cst_26 [1] : vector<32x57xf32> to vector<32xf32>
    %38 = vector.shape_cast %37 : vector<32xf32> to vector<32x1xf32>
    %39 = arith.maximumf %34, %38 : vector<32x1xf32>
    %c128_27 = arith.constant 128 : index
    %c0_28 = arith.constant 0 : index
    %40 = vector.load %arg7[%c128_27, %c0_28] : memref<160x1xf32, #tpu.memory_space<vmem>>, vector<32x1xf32>
    tpu.vector_store %arg7[%c128_27, %c0_28], %39 {strides = array<i32>} : memref<160x1xf32, #tpu.memory_space<vmem>>, vector<32x1xf32>,
    %cst_29 = arith.constant 0.000000e+00 : f32
    %41 = vector.broadcast %cst_29 : f32 to vector<16x32xf32>
    %c0_30 = arith.constant 0 : index
    %c0_31 = arith.constant 0 : index
    %42 = tpu.strided_load %arg7[%c0_30, %c0_31] {strides = array<i32: 10, 1>} : memref<160x1xf32, #tpu.memory_space<vmem>>, vector<16x1xf32>
    %c9 = arith.constant 9 : index
    %c0_32 = arith.constant 0 : index
    %43 = vector.load %arg1[%c9, %c0_32] : memref<19x256xf32, #tpu.memory_space<vmem>>, vector<1x32xf32>
    %44 = vector.broadcast %42 : vector<16x1xf32> to vector<16x32xf32>
    %45 = vector.broadcast %43 : vector<1x32xf32> to vector<16x32xf32>
    %46 = arith.mulf %44, %45 : vector<16x32xf32>
    %47 = arith.addf %41, %46 : vector<16x32xf32>
    %c1_33 = arith.constant 1 : index
    %c0_34 = arith.constant 0 : index
    %48 = tpu.strided_load %arg7[%c1_33, %c0_34] {strides = array<i32: 10, 1>} : memref<160x1xf32, #tpu.memory_space<vmem>>, vector<16x1xf32>
    %c10 = arith.constant 10 : index
    %c0_35 = arith.constant 0 : index
    %49 = vector.load %arg1[%c10, %c0_35] : memref<19x256xf32, #tpu.memory_space<vmem>>, vector<1x32xf32>
    %50 = vector.broadcast %48 : vector<16x1xf32> to vector<16x32xf32>
    %51 = vector.broadcast %49 : vector<1x32xf32> to vector<16x32xf32>
    %52 = arith.mulf %50, %51 : vector<16x32xf32>
    %53 = arith.addf %47, %52 : vector<16x32xf32>
    %c2_36 = arith.constant 2 : index
    %c0_37 = arith.constant 0 : index
    %54 = tpu.strided_load %arg7[%c2_36, %c0_37] {strides = array<i32: 10, 1>} : memref<160x1xf32, #tpu.memory_space<vmem>>, vector<16x1xf32>
    %c11 = arith.constant 11 : index
    %c0_38 = arith.constant 0 : index
    %55 = vector.load %arg1[%c11, %c0_38] : memref<19x256xf32, #tpu.memory_space<vmem>>, vector<1x32xf32>
    %56 = vector.broadcast %54 : vector<16x1xf32> to vector<16x32xf32>
    %57 = vector.broadcast %55 : vector<1x32xf32> to vector<16x32xf32>
    %58 = arith.mulf %56, %57 : vector<16x32xf32>
    %59 = arith.addf %53, %58 : vector<16x32xf32>
    %c3_39 = arith.constant 3 : index
    %c0_40 = arith.constant 0 : index
    %60 = tpu.strided_load %arg7[%c3_39, %c0_40] {strides = array<i32: 10, 1>} : memref<160x1xf32, #tpu.memory_space<vmem>>, vector<16x1xf32>
    %c12 = arith.constant 12 : index
    %c0_41 = arith.constant 0 : index
    %61 = vector.load %arg1[%c12, %c0_41] : memref<19x256xf32, #tpu.memory_space<vmem>>, vector<1x32xf32>
    %62 = vector.broadcast %60 : vector<16x1xf32> to vector<16x32xf32>
    %63 = vector.broadcast %61 : vector<1x32xf32> to vector<16x32xf32>
    %64 = arith.mulf %62, %63 : vector<16x32xf32>
    %65 = arith.addf %59, %64 : vector<16x32xf32>
    %c4_42 = arith.constant 4 : index
    %c0_43 = arith.constant 0 : index
    %66 = tpu.strided_load %arg7[%c4_42, %c0_43] {strides = array<i32: 10, 1>} : memref<160x1xf32, #tpu.memory_space<vmem>>, vector<16x1xf32>
    %c13 = arith.constant 13 : index
    %c0_44 = arith.constant 0 : index
    %67 = vector.load %arg1[%c13, %c0_44] : memref<19x256xf32, #tpu.memory_space<vmem>>, vector<1x32xf32>
    %68 = vector.broadcast %66 : vector<16x1xf32> to vector<16x32xf32>
    %69 = vector.broadcast %67 : vector<1x32xf32> to vector<16x32xf32>
    %70 = arith.mulf %68, %69 : vector<16x32xf32>
    %71 = arith.addf %65, %70 : vector<16x32xf32>
    %c5_45 = arith.constant 5 : index
    %c0_46 = arith.constant 0 : index
    %72 = tpu.strided_load %arg7[%c5_45, %c0_46] {strides = array<i32: 10, 1>} : memref<160x1xf32, #tpu.memory_space<vmem>>, vector<16x1xf32>
    %c14 = arith.constant 14 : index
    %c0_47 = arith.constant 0 : index
    %73 = vector.load %arg1[%c14, %c0_47] : memref<19x256xf32, #tpu.memory_space<vmem>>, vector<1x32xf32>
    %74 = vector.broadcast %72 : vector<16x1xf32> to vector<16x32xf32>
    %75 = vector.broadcast %73 : vector<1x32xf32> to vector<16x32xf32>
    %76 = arith.mulf %74, %75 : vector<16x32xf32>
    %77 = arith.addf %71, %76 : vector<16x32xf32>
    %c6_48 = arith.constant 6 : index
    %c0_49 = arith.constant 0 : index
    %78 = tpu.strided_load %arg7[%c6_48, %c0_49] {strides = array<i32: 10, 1>} : memref<160x1xf32, #tpu.memory_space<vmem>>, vector<16x1xf32>
    %c15 = arith.constant 15 : index
    %c0_50 = arith.constant 0 : index
    %79 = vector.load %arg1[%c15, %c0_50] : memref<19x256xf32, #tpu.memory_space<vmem>>, vector<1x32xf32>
    %80 = vector.broadcast %78 : vector<16x1xf32> to vector<16x32xf32>
    %81 = vector.broadcast %79 : vector<1x32xf32> to vector<16x32xf32>
    %82 = arith.mulf %80, %81 : vector<16x32xf32>
    %83 = arith.addf %77, %82 : vector<16x32xf32>
    %c7_51 = arith.constant 7 : index
    %c0_52 = arith.constant 0 : index
    %84 = tpu.strided_load %arg7[%c7_51, %c0_52] {strides = array<i32: 10, 1>} : memref<160x1xf32, #tpu.memory_space<vmem>>, vector<16x1xf32>
    %c16 = arith.constant 16 : index
    %c0_53 = arith.constant 0 : index
    %85 = vector.load %arg1[%c16, %c0_53] : memref<19x256xf32, #tpu.memory_space<vmem>>, vector<1x32xf32>
    %86 = vector.broadcast %84 : vector<16x1xf32> to vector<16x32xf32>
    %87 = vector.broadcast %85 : vector<1x32xf32> to vector<16x32xf32>
    %88 = arith.mulf %86, %87 : vector<16x32xf32>
    %89 = arith.addf %83, %88 : vector<16x32xf32>
    %c8_54 = arith.constant 8 : index
    %c0_55 = arith.constant 0 : index
    %90 = tpu.strided_load %arg7[%c8_54, %c0_55] {strides = array<i32: 10, 1>} : memref<160x1xf32, #tpu.memory_space<vmem>>, vector<16x1xf32>
    %c17 = arith.constant 17 : index
    %c0_56 = arith.constant 0 : index
    %91 = vector.load %arg1[%c17, %c0_56] : memref<19x256xf32, #tpu.memory_space<vmem>>, vector<1x32xf32>
    %92 = vector.broadcast %90 : vector<16x1xf32> to vector<16x32xf32>
    %93 = vector.broadcast %91 : vector<1x32xf32> to vector<16x32xf32>
    %94 = arith.mulf %92, %93 : vector<16x32xf32>
    %95 = arith.addf %89, %94 : vector<16x32xf32>
    %c9_57 = arith.constant 9 : index
    %c0_58 = arith.constant 0 : index
    %96 = tpu.strided_load %arg7[%c9_57, %c0_58] {strides = array<i32: 10, 1>} : memref<160x1xf32, #tpu.memory_space<vmem>>, vector<16x1xf32>
    %c18 = arith.constant 18 : index
    %c0_59 = arith.constant 0 : index
    %97 = vector.load %arg1[%c18, %c0_59] : memref<19x256xf32, #tpu.memory_space<vmem>>, vector<1x32xf32>
    %98 = vector.broadcast %96 : vector<16x1xf32> to vector<16x32xf32>
    %99 = vector.broadcast %97 : vector<1x32xf32> to vector<16x32xf32>
    %100 = arith.mulf %98, %99 : vector<16x32xf32>
    %101 = arith.addf %95, %100 : vector<16x32xf32>
    %102 = vector.broadcast %0 : vector<1x32xf32> to vector<16x32xf32>
    %103 = arith.addf %101, %102 : vector<16x32xf32>
    %cst_60 = arith.constant dense<0.000000e+00> : vector<32xf32>
    %104 = vector.multi_reduction <add>, %103, %cst_60 [0] : vector<16x32xf32> to vector<32xf32>
    %105 = vector.shape_cast %104 : vector<32xf32> to vector<1x32xf32>
    %cst_61 = arith.constant 1.600000e+01 : f32
    %106 = vector.broadcast %cst_61 : f32 to vector<1x32xf32>
    %107 = arith.divf %105, %106 : vector<1x32xf32>
    %108 = arith.mulf %103, %103 : vector<16x32xf32>
    %cst_62 = arith.constant dense<0.000000e+00> : vector<32xf32>
    %109 = vector.multi_reduction <add>, %108, %cst_62 [0] : vector<16x32xf32> to vector<32xf32>
    %110 = vector.shape_cast %109 : vector<32xf32> to vector<1x32xf32>
    %cst_63 = arith.constant 1.600000e+01 : f32
    %111 = vector.broadcast %cst_63 : f32 to vector<1x32xf32>
    %112 = arith.divf %110, %111 : vector<1x32xf32>
    %113 = arith.mulf %107, %107 : vector<1x32xf32>
    %114 = arith.subf %112, %113 : vector<1x32xf32>
    %115 = vector.broadcast %107 : vector<1x32xf32> to vector<16x32xf32>
    %116 = arith.subf %103, %115 : vector<16x32xf32>
    %cst_64 = arith.constant 9.99999974E-6 : f32
    %117 = vector.broadcast %cst_64 : f32 to vector<1x32xf32>
    %118 = arith.addf %114, %117 : vector<1x32xf32>
    %119 = math.rsqrt %118 : vector<1x32xf32>
    %120 = vector.broadcast %119 : vector<1x32xf32> to vector<16x32xf32>
    %121 = arith.mulf %116, %120 : vector<16x32xf32>
    %122 = vector.broadcast %1 : vector<1x32xf32> to vector<16x32xf32>
    %123 = arith.mulf %121, %122 : vector<16x32xf32>
    %124 = vector.broadcast %2 : vector<1x32xf32> to vector<16x32xf32>
    %125 = arith.addf %123, %124 : vector<16x32xf32>
    %cst_65 = arith.constant 0.000000e+00 : f32
    %126 = vector.broadcast %cst_65 : f32 to vector<16x32xf32>
    %127 = arith.maximumf %125, %126 : vector<16x32xf32>
    %cst_66 = arith.constant 0.000000e+00 : f32
    %128 = vector.broadcast %cst_66 : f32 to vector<4x32xf32>
    %c0_67 = arith.constant 0 : index
    %c0_68 = arith.constant 0 : index
    %129 = vector.load %arg8[%c0_67, %c0_68] : memref<32x32xf32, #tpu.memory_space<vmem>>, vector<4x32xf32>
    tpu.vector_store %arg8[%c0_67, %c0_68], %128 {strides = array<i32>} : memref<32x32xf32, #tpu.memory_space<vmem>>, vector<4x32xf32>,
    %130 = vector.extract_strided_slice %127 {offsets = [0, 0], sizes = [8, 32], strides = [1, 1]} : vector<16x32xf32> to vector<8x32xf32>
    %c4_69 = arith.constant 4 : index
    %c0_70 = arith.constant 0 : index
    %131 = vector.load %arg8[%c4_69, %c0_70] : memref<32x32xf32, #tpu.memory_space<vmem>>, vector<8x32xf32>
    tpu.vector_store %arg8[%c4_69, %c0_70], %130 {strides = array<i32>} : memref<32x32xf32, #tpu.memory_space<vmem>>, vector<8x32xf32>,
    %cst_71 = arith.constant 0.000000e+00 : f32
    %132 = vector.broadcast %cst_71 : f32 to vector<4x32xf32>
    %c12_72 = arith.constant 12 : index
    %c0_73 = arith.constant 0 : index
    %133 = vector.load %arg8[%c12_72, %c0_73] : memref<32x32xf32, #tpu.memory_space<vmem>>, vector<4x32xf32>
    tpu.vector_store %arg8[%c12_72, %c0_73], %132 {strides = array<i32>} : memref<32x32xf32, #tpu.memory_space<vmem>>, vector<4x32xf32>,
    %cst_74 = arith.constant 0.000000e+00 : f32
    %134 = vector.broadcast %cst_74 : f32 to vector<4x32xf32>
    %c16_75 = arith.constant 16 : index
    %c0_76 = arith.constant 0 : index
    %135 = vector.load %arg8[%c16_75, %c0_76] : memref<32x32xf32, #tpu.memory_space<vmem>>, vector<4x32xf32>
    tpu.vector_store %arg8[%c16_75, %c0_76], %134 {strides = array<i32>} : memref<32x32xf32, #tpu.memory_space<vmem>>, vector<4x32xf32>,
    %136 = vector.extract_strided_slice %127 {offsets = [8, 0], sizes = [8, 32], strides = [1, 1]} : vector<16x32xf32> to vector<8x32xf32>
    %c20 = arith.constant 20 : index
    %c0_77 = arith.constant 0 : index
    %137 = vector.load %arg8[%c20, %c0_77] : memref<32x32xf32, #tpu.memory_space<vmem>>, vector<8x32xf32>
    tpu.vector_store %arg8[%c20, %c0_77], %136 {strides = array<i32>} : memref<32x32xf32, #tpu.memory_space<vmem>>, vector<8x32xf32>,
    %cst_78 = arith.constant 0.000000e+00 : f32
    %138 = vector.broadcast %cst_78 : f32 to vector<4x32xf32>
    %c28 = arith.constant 28 : index
    %c0_79 = arith.constant 0 : index
    %139 = vector.load %arg8[%c28, %c0_79] : memref<32x32xf32, #tpu.memory_space<vmem>>, vector<4x32xf32>
    tpu.vector_store %arg8[%c28, %c0_79], %138 {strides = array<i32>} : memref<32x32xf32, #tpu.memory_space<vmem>>, vector<4x32xf32>,
    %cst_80 = arith.constant 0.000000e+00 : f32
    %140 = vector.broadcast %cst_80 : f32 to vector<4x64xf32>
    %c0_81 = arith.constant 0 : index
    %c0_82 = arith.constant 0 : index
    %141 = tpu.strided_load %arg8[%c0_81, %c0_82] {strides = array<i32: 4, 1>} : memref<32x32xf32, #tpu.memory_space<vmem>>, vector<2x32xf32>
    %c16_83 = arith.constant 16 : index
    %c0_84 = arith.constant 0 : index
    %142 = tpu.strided_load %arg8[%c16_83, %c0_84] {strides = array<i32: 4, 1>} : memref<32x32xf32, #tpu.memory_space<vmem>>, vector<2x32xf32>
    %143 = tpu.concatenate %141, %142 in 0 : vector<2x32xf32>, vector<2x32xf32> -> vector<4x32xf32>
    %c0_85 = arith.constant 0 : index
    %c0_86 = arith.constant 0 : index
    %144 = vector.load %arg2[%c0_85, %c0_86] : memref<384x64xf32, #tpu.memory_space<vmem>>, vector<32x64xf32>
    %cst_87 = arith.constant dense<0.000000e+00> : vector<4x64xf32>
    %145 = tpu.matmul %143, %144, %cst_87 {dimension_numbers = #tpu.dot_dimension_numbers<[1], [0], [0], [1], [0, 0, 1, 1], [], []>} : vector<4x32xf32>, vector<32x64xf32>, vector<4x64xf32> -> vector<4x64xf32>
    %146 = arith.addf %140, %145 : vector<4x64xf32>
    %c1_88 = arith.constant 1 : index
    %c0_89 = arith.constant 0 : index
    %147 = tpu.strided_load %arg8[%c1_88, %c0_89] {strides = array<i32: 4, 1>} : memref<32x32xf32, #tpu.memory_space<vmem>>, vector<2x32xf32>
    %c17_90 = arith.constant 17 : index
    %c0_91 = arith.constant 0 : index
    %148 = tpu.strided_load %arg8[%c17_90, %c0_91] {strides = array<i32: 4, 1>} : memref<32x32xf32, #tpu.memory_space<vmem>>, vector<2x32xf32>
    %149 = tpu.concatenate %147, %148 in 0 : vector<2x32xf32>, vector<2x32xf32> -> vector<4x32xf32>
    %c32 = arith.constant 32 : index
    %c0_92 = arith.constant 0 : index
    %150 = vector.load %arg2[%c32, %c0_92] : memref<384x64xf32, #tpu.memory_space<vmem>>, vector<32x64xf32>
    %cst_93 = arith.constant dense<0.000000e+00> : vector<4x64xf32>
    %151 = tpu.matmul %149, %150, %cst_93 {dimension_numbers = #tpu.dot_dimension_numbers<[1], [0], [0], [1], [0, 0, 1, 1], [], []>} : vector<4x32xf32>, vector<32x64xf32>, vector<4x64xf32> -> vector<4x64xf32>
    %152 = arith.addf %146, %151 : vector<4x64xf32>
    %c2_94 = arith.constant 2 : index
    %c0_95 = arith.constant 0 : index
    %153 = tpu.strided_load %arg8[%c2_94, %c0_95] {strides = array<i32: 4, 1>} : memref<32x32xf32, #tpu.memory_space<vmem>>, vector<2x32xf32>
    %c18_96 = arith.constant 18 : index
    %c0_97 = arith.constant 0 : index
    %154 = tpu.strided_load %arg8[%c18_96, %c0_97] {strides = array<i32: 4, 1>} : memref<32x32xf32, #tpu.memory_space<vmem>>, vector<2x32xf32>
    %155 = tpu.concatenate %153, %154 in 0 : vector<2x32xf32>, vector<2x32xf32> -> vector<4x32xf32>
    %c64 = arith.constant 64 : index
    %c0_98 = arith.constant 0 : index
    %156 = vector.load %arg2[%c64, %c0_98] : memref<384x64xf32, #tpu.memory_space<vmem>>, vector<32x64xf32>
    %cst_99 = arith.constant dense<0.000000e+00> : vector<4x64xf32>
    %157 = tpu.matmul %155, %156, %cst_99 {dimension_numbers = #tpu.dot_dimension_numbers<[1], [0], [0], [1], [0, 0, 1, 1], [], []>} : vector<4x32xf32>, vector<32x64xf32>, vector<4x64xf32> -> vector<4x64xf32>
    %158 = arith.addf %152, %157 : vector<4x64xf32>
    %c3_100 = arith.constant 3 : index
    %c0_101 = arith.constant 0 : index
    %159 = tpu.strided_load %arg8[%c3_100, %c0_101] {strides = array<i32: 4, 1>} : memref<32x32xf32, #tpu.memory_space<vmem>>, vector<2x32xf32>
    %c19 = arith.constant 19 : index
    %c0_102 = arith.constant 0 : index
    %160 = tpu.strided_load %arg8[%c19, %c0_102] {strides = array<i32: 4, 1>} : memref<32x32xf32, #tpu.memory_space<vmem>>, vector<2x32xf32>
    %161 = tpu.concatenate %159, %160 in 0 : vector<2x32xf32>, vector<2x32xf32> -> vector<4x32xf32>
    %c96 = arith.constant 96 : index
    %c0_103 = arith.constant 0 : index
    %162 = vector.load %arg2[%c96, %c0_103] : memref<384x64xf32, #tpu.memory_space<vmem>>, vector<32x64xf32>
    %cst_104 = arith.constant dense<0.000000e+00> : vector<4x64xf32>
    %163 = tpu.matmul %161, %162, %cst_104 {dimension_numbers = #tpu.dot_dimension_numbers<[1], [0], [0], [1], [0, 0, 1, 1], [], []>} : vector<4x32xf32>, vector<32x64xf32>, vector<4x64xf32> -> vector<4x64xf32>
    %164 = arith.addf %158, %163 : vector<4x64xf32>
    %c4_105 = arith.constant 4 : index
    %c0_106 = arith.constant 0 : index
    %165 = tpu.strided_load %arg8[%c4_105, %c0_106] {strides = array<i32: 4, 1>} : memref<32x32xf32, #tpu.memory_space<vmem>>, vector<2x32xf32>
    %c20_107 = arith.constant 20 : index
    %c0_108 = arith.constant 0 : index
    %166 = tpu.strided_load %arg8[%c20_107, %c0_108] {strides = array<i32: 4, 1>} : memref<32x32xf32, #tpu.memory_space<vmem>>, vector<2x32xf32>
    %167 = tpu.concatenate %165, %166 in 0 : vector<2x32xf32>, vector<2x32xf32> -> vector<4x32xf32>
    %c128_109 = arith.constant 128 : index
    %c0_110 = arith.constant 0 : index
    %168 = vector.load %arg2[%c128_109, %c0_110] : memref<384x64xf32, #tpu.memory_space<vmem>>, vector<32x64xf32>
    %cst_111 = arith.constant dense<0.000000e+00> : vector<4x64xf32>
    %169 = tpu.matmul %167, %168, %cst_111 {dimension_numbers = #tpu.dot_dimension_numbers<[1], [0], [0], [1], [0, 0, 1, 1], [], []>} : vector<4x32xf32>, vector<32x64xf32>, vector<4x64xf32> -> vector<4x64xf32>
    %170 = arith.addf %164, %169 : vector<4x64xf32>
    %c5_112 = arith.constant 5 : index
    %c0_113 = arith.constant 0 : index
    %171 = tpu.strided_load %arg8[%c5_112, %c0_113] {strides = array<i32: 4, 1>} : memref<32x32xf32, #tpu.memory_space<vmem>>, vector<2x32xf32>
    %c21 = arith.constant 21 : index
    %c0_114 = arith.constant 0 : index
    %172 = tpu.strided_load %arg8[%c21, %c0_114] {strides = array<i32: 4, 1>} : memref<32x32xf32, #tpu.memory_space<vmem>>, vector<2x32xf32>
    %173 = tpu.concatenate %171, %172 in 0 : vector<2x32xf32>, vector<2x32xf32> -> vector<4x32xf32>
    %c160 = arith.constant 160 : index
    %c0_115 = arith.constant 0 : index
    %174 = vector.load %arg2[%c160, %c0_115] : memref<384x64xf32, #tpu.memory_space<vmem>>, vector<32x64xf32>
    %cst_116 = arith.constant dense<0.000000e+00> : vector<4x64xf32>
    %175 = tpu.matmul %173, %174, %cst_116 {dimension_numbers = #tpu.dot_dimension_numbers<[1], [0], [0], [1], [0, 0, 1, 1], [], []>} : vector<4x32xf32>, vector<32x64xf32>, vector<4x64xf32> -> vector<4x64xf32>
    %176 = arith.addf %170, %175 : vector<4x64xf32>
    %c6_117 = arith.constant 6 : index
    %c0_118 = arith.constant 0 : index
    %177 = tpu.strided_load %arg8[%c6_117, %c0_118] {strides = array<i32: 4, 1>} : memref<32x32xf32, #tpu.memory_space<vmem>>, vector<2x32xf32>
    %c22 = arith.constant 22 : index
    %c0_119 = arith.constant 0 : index
    %178 = tpu.strided_load %arg8[%c22, %c0_119] {strides = array<i32: 4, 1>} : memref<32x32xf32, #tpu.memory_space<vmem>>, vector<2x32xf32>
    %179 = tpu.concatenate %177, %178 in 0 : vector<2x32xf32>, vector<2x32xf32> -> vector<4x32xf32>
    %c192 = arith.constant 192 : index
    %c0_120 = arith.constant 0 : index
    %180 = vector.load %arg2[%c192, %c0_120] : memref<384x64xf32, #tpu.memory_space<vmem>>, vector<32x64xf32>
    %cst_121 = arith.constant dense<0.000000e+00> : vector<4x64xf32>
    %181 = tpu.matmul %179, %180, %cst_121 {dimension_numbers = #tpu.dot_dimension_numbers<[1], [0], [0], [1], [0, 0, 1, 1], [], []>} : vector<4x32xf32>, vector<32x64xf32>, vector<4x64xf32> -> vector<4x64xf32>
    %182 = arith.addf %176, %181 : vector<4x64xf32>
    %c7_122 = arith.constant 7 : index
    %c0_123 = arith.constant 0 : index
    %183 = tpu.strided_load %arg8[%c7_122, %c0_123] {strides = array<i32: 4, 1>} : memref<32x32xf32, #tpu.memory_space<vmem>>, vector<2x32xf32>
    %c23 = arith.constant 23 : index
    %c0_124 = arith.constant 0 : index
    %184 = tpu.strided_load %arg8[%c23, %c0_124] {strides = array<i32: 4, 1>} : memref<32x32xf32, #tpu.memory_space<vmem>>, vector<2x32xf32>
    %185 = tpu.concatenate %183, %184 in 0 : vector<2x32xf32>, vector<2x32xf32> -> vector<4x32xf32>
    %c224 = arith.constant 224 : index
    %c0_125 = arith.constant 0 : index
    %186 = vector.load %arg2[%c224, %c0_125] : memref<384x64xf32, #tpu.memory_space<vmem>>, vector<32x64xf32>
    %cst_126 = arith.constant dense<0.000000e+00> : vector<4x64xf32>
    %187 = tpu.matmul %185, %186, %cst_126 {dimension_numbers = #tpu.dot_dimension_numbers<[1], [0], [0], [1], [0, 0, 1, 1], [], []>} : vector<4x32xf32>, vector<32x64xf32>, vector<4x64xf32> -> vector<4x64xf32>
    %188 = arith.addf %182, %187 : vector<4x64xf32>
    %c8_127 = arith.constant 8 : index
    %c0_128 = arith.constant 0 : index
    %189 = tpu.strided_load %arg8[%c8_127, %c0_128] {strides = array<i32: 4, 1>} : memref<32x32xf32, #tpu.memory_space<vmem>>, vector<2x32xf32>
    %c24 = arith.constant 24 : index
    %c0_129 = arith.constant 0 : index
    %190 = tpu.strided_load %arg8[%c24, %c0_129] {strides = array<i32: 4, 1>} : memref<32x32xf32, #tpu.memory_space<vmem>>, vector<2x32xf32>
    %191 = tpu.concatenate %189, %190 in 0 : vector<2x32xf32>, vector<2x32xf32> -> vector<4x32xf32>
    %c256_130 = arith.constant 256 : index
    %c0_131 = arith.constant 0 : index
    %192 = vector.load %arg2[%c256_130, %c0_131] : memref<384x64xf32, #tpu.memory_space<vmem>>, vector<32x64xf32>
    %cst_132 = arith.constant dense<0.000000e+00> : vector<4x64xf32>
    %193 = tpu.matmul %191, %192, %cst_132 {dimension_numbers = #tpu.dot_dimension_numbers<[1], [0], [0], [1], [0, 0, 1, 1], [], []>} : vector<4x32xf32>, vector<32x64xf32>, vector<4x64xf32> -> vector<4x64xf32>
    %194 = arith.addf %188, %193 : vector<4x64xf32>
    %c9_133 = arith.constant 9 : index
    %c0_134 = arith.constant 0 : index
    %195 = tpu.strided_load %arg8[%c9_133, %c0_134] {strides = array<i32: 4, 1>} : memref<32x32xf32, #tpu.memory_space<vmem>>, vector<2x32xf32>
    %c25 = arith.constant 25 : index
    %c0_135 = arith.constant 0 : index
    %196 = tpu.strided_load %arg8[%c25, %c0_135] {strides = array<i32: 4, 1>} : memref<32x32xf32, #tpu.memory_space<vmem>>, vector<2x32xf32>
    %197 = tpu.concatenate %195, %196 in 0 : vector<2x32xf32>, vector<2x32xf32> -> vector<4x32xf32>
    %c288 = arith.constant 288 : index
    %c0_136 = arith.constant 0 : index
    %198 = vector.load %arg2[%c288, %c0_136] : memref<384x64xf32, #tpu.memory_space<vmem>>, vector<32x64xf32>
    %cst_137 = arith.constant dense<0.000000e+00> : vector<4x64xf32>
    %199 = tpu.matmul %197, %198, %cst_137 {dimension_numbers = #tpu.dot_dimension_numbers<[1], [0], [0], [1], [0, 0, 1, 1], [], []>} : vector<4x32xf32>, vector<32x64xf32>, vector<4x64xf32> -> vector<4x64xf32>
    %200 = arith.addf %194, %199 : vector<4x64xf32>
    %c10_138 = arith.constant 10 : index
    %c0_139 = arith.constant 0 : index
    %201 = tpu.strided_load %arg8[%c10_138, %c0_139] {strides = array<i32: 4, 1>} : memref<32x32xf32, #tpu.memory_space<vmem>>, vector<2x32xf32>
    %c26 = arith.constant 26 : index
    %c0_140 = arith.constant 0 : index
    %202 = tpu.strided_load %arg8[%c26, %c0_140] {strides = array<i32: 4, 1>} : memref<32x32xf32, #tpu.memory_space<vmem>>, vector<2x32xf32>
    %203 = tpu.concatenate %201, %202 in 0 : vector<2x32xf32>, vector<2x32xf32> -> vector<4x32xf32>
    %c320 = arith.constant 320 : index
    %c0_141 = arith.constant 0 : index
    %204 = vector.load %arg2[%c320, %c0_141] : memref<384x64xf32, #tpu.memory_space<vmem>>, vector<32x64xf32>
    %cst_142 = arith.constant dense<0.000000e+00> : vector<4x64xf32>
    %205 = tpu.matmul %203, %204, %cst_142 {dimension_numbers = #tpu.dot_dimension_numbers<[1], [0], [0], [1], [0, 0, 1, 1], [], []>} : vector<4x32xf32>, vector<32x64xf32>, vector<4x64xf32> -> vector<4x64xf32>
    %206 = arith.addf %200, %205 : vector<4x64xf32>
    %c11_143 = arith.constant 11 : index
    %c0_144 = arith.constant 0 : index
    %207 = tpu.strided_load %arg8[%c11_143, %c0_144] {strides = array<i32: 4, 1>} : memref<32x32xf32, #tpu.memory_space<vmem>>, vector<2x32xf32>
    %c27 = arith.constant 27 : index
    %c0_145 = arith.constant 0 : index
    %208 = tpu.strided_load %arg8[%c27, %c0_145] {strides = array<i32: 4, 1>} : memref<32x32xf32, #tpu.memory_space<vmem>>, vector<2x32xf32>
    %209 = tpu.concatenate %207, %208 in 0 : vector<2x32xf32>, vector<2x32xf32> -> vector<4x32xf32>
    %c352 = arith.constant 352 : index
    %c0_146 = arith.constant 0 : index
    %210 = vector.load %arg2[%c352, %c0_146] : memref<384x64xf32, #tpu.memory_space<vmem>>, vector<32x64xf32>
    %cst_147 = arith.constant dense<0.000000e+00> : vector<4x64xf32>
    %211 = tpu.matmul %209, %210, %cst_147 {dimension_numbers = #tpu.dot_dimension_numbers<[1], [0], [0], [1], [0, 0, 1, 1], [], []>} : vector<4x32xf32>, vector<32x64xf32>, vector<4x64xf32> -> vector<4x64xf32>
    %212 = arith.addf %206, %211 : vector<4x64xf32>
    %213 = vector.broadcast %3 : vector<1x64xf32> to vector<4x64xf32>
    %214 = arith.addf %212, %213 : vector<4x64xf32>
    %cst_148 = arith.constant dense<0.000000e+00> : vector<64xf32>
    %215 = vector.multi_reduction <add>, %214, %cst_148 [0] : vector<4x64xf32> to vector<64xf32>
    %216 = vector.shape_cast %215 : vector<64xf32> to vector<1x64xf32>
    %cst_149 = arith.constant 4.000000e+00 : f32
    %217 = vector.broadcast %cst_149 : f32 to vector<1x64xf32>
    %218 = arith.divf %216, %217 : vector<1x64xf32>
    %219 = arith.mulf %214, %214 : vector<4x64xf32>
    %cst_150 = arith.constant dense<0.000000e+00> : vector<64xf32>
    %220 = vector.multi_reduction <add>, %219, %cst_150 [0] : vector<4x64xf32> to vector<64xf32>
    %221 = vector.shape_cast %220 : vector<64xf32> to vector<1x64xf32>
    %cst_151 = arith.constant 4.000000e+00 : f32
    %222 = vector.broadcast %cst_151 : f32 to vector<1x64xf32>
    %223 = arith.divf %221, %222 : vector<1x64xf32>
    %224 = arith.mulf %218, %218 : vector<1x64xf32>
    %225 = arith.subf %223, %224 : vector<1x64xf32>
    %226 = vector.broadcast %218 : vector<1x64xf32> to vector<4x64xf32>
    %227 = arith.subf %214, %226 : vector<4x64xf32>
    %cst_152 = arith.constant 9.99999974E-6 : f32
    %228 = vector.broadcast %cst_152 : f32 to vector<1x64xf32>
    %229 = arith.addf %225, %228 : vector<1x64xf32>
    %230 = math.rsqrt %229 : vector<1x64xf32>
    %231 = vector.broadcast %230 : vector<1x64xf32> to vector<4x64xf32>
    %232 = arith.mulf %227, %231 : vector<4x64xf32>
    %233 = vector.broadcast %4 : vector<1x64xf32> to vector<4x64xf32>
    %234 = arith.mulf %232, %233 : vector<4x64xf32>
    %235 = vector.broadcast %5 : vector<1x64xf32> to vector<4x64xf32>
    %236 = arith.addf %234, %235 : vector<4x64xf32>
    %cst_153 = arith.constant 0.000000e+00 : f32
    %237 = vector.broadcast %cst_153 : f32 to vector<4x64xf32>
    %238 = arith.maximumf %236, %237 : vector<4x64xf32>
    %cst_154 = arith.constant 0.000000e+00 : f32
    %239 = vector.broadcast %cst_154 : f32 to vector<2x64xf32>
    %c0_155 = arith.constant 0 : index
    %c0_156 = arith.constant 0 : index
    %240 = vector.load %arg9[%c0_155, %c0_156] : memref<12x64xf32, #tpu.memory_space<vmem>>, vector<2x64xf32>
    tpu.vector_store %arg9[%c0_155, %c0_156], %239 {strides = array<i32>} : memref<12x64xf32, #tpu.memory_space<vmem>>, vector<2x64xf32>,
    %241 = vector.extract_strided_slice %238 {offsets = [0, 0], sizes = [2, 64], strides = [1, 1]} : vector<4x64xf32> to vector<2x64xf32>
    %c2_157 = arith.constant 2 : index
    %c0_158 = arith.constant 0 : index
    %242 = vector.load %arg9[%c2_157, %c0_158] : memref<12x64xf32, #tpu.memory_space<vmem>>, vector<2x64xf32>
    tpu.vector_store %arg9[%c2_157, %c0_158], %241 {strides = array<i32>} : memref<12x64xf32, #tpu.memory_space<vmem>>, vector<2x64xf32>,
    %cst_159 = arith.constant 0.000000e+00 : f32
    %243 = vector.broadcast %cst_159 : f32 to vector<2x64xf32>
    %c4_160 = arith.constant 4 : index
    %c0_161 = arith.constant 0 : index
    %244 = vector.load %arg9[%c4_160, %c0_161] : memref<12x64xf32, #tpu.memory_space<vmem>>, vector<2x64xf32>
    tpu.vector_store %arg9[%c4_160, %c0_161], %243 {strides = array<i32>} : memref<12x64xf32, #tpu.memory_space<vmem>>, vector<2x64xf32>,
    %cst_162 = arith.constant 0.000000e+00 : f32
    %245 = vector.broadcast %cst_162 : f32 to vector<2x64xf32>
    %c6_163 = arith.constant 6 : index
    %c0_164 = arith.constant 0 : index
    %246 = vector.load %arg9[%c6_163, %c0_164] : memref<12x64xf32, #tpu.memory_space<vmem>>, vector<2x64xf32>
    tpu.vector_store %arg9[%c6_163, %c0_164], %245 {strides = array<i32>} : memref<12x64xf32, #tpu.memory_space<vmem>>, vector<2x64xf32>,
    %247 = vector.extract_strided_slice %238 {offsets = [2, 0], sizes = [2, 64], strides = [1, 1]} : vector<4x64xf32> to vector<2x64xf32>
    %c8_165 = arith.constant 8 : index
    %c0_166 = arith.constant 0 : index
    %248 = vector.load %arg9[%c8_165, %c0_166] : memref<12x64xf32, #tpu.memory_space<vmem>>, vector<2x64xf32>
    tpu.vector_store %arg9[%c8_165, %c0_166], %247 {strides = array<i32>} : memref<12x64xf32, #tpu.memory_space<vmem>>, vector<2x64xf32>,
    %cst_167 = arith.constant 0.000000e+00 : f32
    %249 = vector.broadcast %cst_167 : f32 to vector<2x64xf32>
    %c10_168 = arith.constant 10 : index
    %c0_169 = arith.constant 0 : index
    %250 = vector.load %arg9[%c10_168, %c0_169] : memref<12x64xf32, #tpu.memory_space<vmem>>, vector<2x64xf32>
    tpu.vector_store %arg9[%c10_168, %c0_169], %249 {strides = array<i32>} : memref<12x64xf32, #tpu.memory_space<vmem>>, vector<2x64xf32>,
    %cst_170 = arith.constant 0.000000e+00 : f32
    %251 = vector.broadcast %cst_170 : f32 to vector<4x32xf32>
    %c0_171 = arith.constant 0 : index
    %c0_172 = arith.constant 0 : index
    %252 = vector.load %arg9[%c0_171, %c0_172] : memref<12x64xf32, #tpu.memory_space<vmem>>, vector<2x64xf32>
    %c6_173 = arith.constant 6 : index
    %c0_174 = arith.constant 0 : index
    %253 = vector.load %arg9[%c6_173, %c0_174] : memref<12x64xf32, #tpu.memory_space<vmem>>, vector<2x64xf32>
    %254 = tpu.concatenate %252, %253 in 0 : vector<2x64xf32>, vector<2x64xf32> -> vector<4x64xf32>
    %c0_175 = arith.constant 0 : index
    %c0_176 = arith.constant 0 : index
    %255 = vector.load %arg3[%c0_175, %c0_176] : memref<320x32xf32, #tpu.memory_space<vmem>>, vector<64x32xf32>
    %cst_177 = arith.constant dense<0.000000e+00> : vector<4x32xf32>
    %256 = tpu.matmul %254, %255, %cst_177 {dimension_numbers = #tpu.dot_dimension_numbers<[1], [0], [0], [1], [0, 0, 1, 1], [], []>} : vector<4x64xf32>, vector<64x32xf32>, vector<4x32xf32> -> vector<4x32xf32>
    %257 = arith.addf %251, %256 : vector<4x32xf32>
    %c1_178 = arith.constant 1 : index
    %c0_179 = arith.constant 0 : index
    %258 = vector.load %arg9[%c1_178, %c0_179] : memref<12x64xf32, #tpu.memory_space<vmem>>, vector<2x64xf32>
    %c7_180 = arith.constant 7 : index
    %c0_181 = arith.constant 0 : index
    %259 = vector.load %arg9[%c7_180, %c0_181] : memref<12x64xf32, #tpu.memory_space<vmem>>, vector<2x64xf32>
    %260 = tpu.concatenate %258, %259 in 0 : vector<2x64xf32>, vector<2x64xf32> -> vector<4x64xf32>
    %c64_182 = arith.constant 64 : index
    %c0_183 = arith.constant 0 : index
    %261 = vector.load %arg3[%c64_182, %c0_183] : memref<320x32xf32, #tpu.memory_space<vmem>>, vector<64x32xf32>
    %cst_184 = arith.constant dense<0.000000e+00> : vector<4x32xf32>
    %262 = tpu.matmul %260, %261, %cst_184 {dimension_numbers = #tpu.dot_dimension_numbers<[1], [0], [0], [1], [0, 0, 1, 1], [], []>} : vector<4x64xf32>, vector<64x32xf32>, vector<4x32xf32> -> vector<4x32xf32>
    %263 = arith.addf %257, %262 : vector<4x32xf32>
    %c2_185 = arith.constant 2 : index
    %c0_186 = arith.constant 0 : index
    %264 = vector.load %arg9[%c2_185, %c0_186] : memref<12x64xf32, #tpu.memory_space<vmem>>, vector<2x64xf32>
    %c8_187 = arith.constant 8 : index
    %c0_188 = arith.constant 0 : index
    %265 = vector.load %arg9[%c8_187, %c0_188] : memref<12x64xf32, #tpu.memory_space<vmem>>, vector<2x64xf32>
    %266 = tpu.concatenate %264, %265 in 0 : vector<2x64xf32>, vector<2x64xf32> -> vector<4x64xf32>
    %c128_189 = arith.constant 128 : index
    %c0_190 = arith.constant 0 : index
    %267 = vector.load %arg3[%c128_189, %c0_190] : memref<320x32xf32, #tpu.memory_space<vmem>>, vector<64x32xf32>
    %cst_191 = arith.constant dense<0.000000e+00> : vector<4x32xf32>
    %268 = tpu.matmul %266, %267, %cst_191 {dimension_numbers = #tpu.dot_dimension_numbers<[1], [0], [0], [1], [0, 0, 1, 1], [], []>} : vector<4x64xf32>, vector<64x32xf32>, vector<4x32xf32> -> vector<4x32xf32>
    %269 = arith.addf %263, %268 : vector<4x32xf32>
    %c3_192 = arith.constant 3 : index
    %c0_193 = arith.constant 0 : index
    %270 = vector.load %arg9[%c3_192, %c0_193] : memref<12x64xf32, #tpu.memory_space<vmem>>, vector<2x64xf32>
    %c9_194 = arith.constant 9 : index
    %c0_195 = arith.constant 0 : index
    %271 = vector.load %arg9[%c9_194, %c0_195] : memref<12x64xf32, #tpu.memory_space<vmem>>, vector<2x64xf32>
    %272 = tpu.concatenate %270, %271 in 0 : vector<2x64xf32>, vector<2x64xf32> -> vector<4x64xf32>
    %c192_196 = arith.constant 192 : index
    %c0_197 = arith.constant 0 : index
    %273 = vector.load %arg3[%c192_196, %c0_197] : memref<320x32xf32, #tpu.memory_space<vmem>>, vector<64x32xf32>
    %cst_198 = arith.constant dense<0.000000e+00> : vector<4x32xf32>
    %274 = tpu.matmul %272, %273, %cst_198 {dimension_numbers = #tpu.dot_dimension_numbers<[1], [0], [0], [1], [0, 0, 1, 1], [], []>} : vector<4x64xf32>, vector<64x32xf32>, vector<4x32xf32> -> vector<4x32xf32>
    %275 = arith.addf %269, %274 : vector<4x32xf32>
    %c4_199 = arith.constant 4 : index
    %c0_200 = arith.constant 0 : index
    %276 = vector.load %arg9[%c4_199, %c0_200] : memref<12x64xf32, #tpu.memory_space<vmem>>, vector<2x64xf32>
    %c10_201 = arith.constant 10 : index
    %c0_202 = arith.constant 0 : index
    %277 = vector.load %arg9[%c10_201, %c0_202] : memref<12x64xf32, #tpu.memory_space<vmem>>, vector<2x64xf32>
    %278 = tpu.concatenate %276, %277 in 0 : vector<2x64xf32>, vector<2x64xf32> -> vector<4x64xf32>
    %c256_203 = arith.constant 256 : index
    %c0_204 = arith.constant 0 : index
    %279 = vector.load %arg3[%c256_203, %c0_204] : memref<320x32xf32, #tpu.memory_space<vmem>>, vector<64x32xf32>
    %cst_205 = arith.constant dense<0.000000e+00> : vector<4x32xf32>
    %280 = tpu.matmul %278, %279, %cst_205 {dimension_numbers = #tpu.dot_dimension_numbers<[1], [0], [0], [1], [0, 0, 1, 1], [], []>} : vector<4x64xf32>, vector<64x32xf32>, vector<4x32xf32> -> vector<4x32xf32>
    %281 = arith.addf %275, %280 : vector<4x32xf32>
    %282 = vector.broadcast %6 : vector<1x32xf32> to vector<4x32xf32>
    %283 = arith.addf %281, %282 : vector<4x32xf32>
    %c0_206 = arith.constant 0 : index
    %c0_207 = arith.constant 0 : index
    %284 = vector.load %arg4[%c0_206, %c0_207] : memref<32x256xf32, #tpu.memory_space<vmem>>, vector<32x256xf32>
    %cst_208 = arith.constant dense<0.000000e+00> : vector<4x256xf32>
    %285 = tpu.matmul %283, %284, %cst_208 {dimension_numbers = #tpu.dot_dimension_numbers<[1], [0], [0], [1], [0, 0, 1, 1], [], []>} : vector<4x32xf32>, vector<32x256xf32>, vector<4x256xf32> -> vector<4x256xf32>
    %286 = vector.broadcast %7 : vector<1x256xf32> to vector<4x256xf32>
    %287 = arith.addf %285, %286 : vector<4x256xf32>
    %288 = vector.extract_strided_slice %287 {offsets = [0, 0], sizes = [2, 256], strides = [1, 1]} : vector<4x256xf32> to vector<2x256xf32>
    %cst_209 = arith.constant dense<0.000000e+00> : vector<256xf32>
    %289 = vector.multi_reduction <add>, %288, %cst_209 [0] : vector<2x256xf32> to vector<256xf32>
    %290 = vector.shape_cast %289 : vector<256xf32> to vector<1x256xf32>
    %cst_210 = arith.constant 2.000000e+00 : f32
    %291 = vector.broadcast %cst_210 : f32 to vector<1x256xf32>
    %292 = arith.divf %290, %291 : vector<1x256xf32>
    %293 = vector.extract_strided_slice %287 {offsets = [2, 0], sizes = [2, 256], strides = [1, 1]} : vector<4x256xf32> to vector<2x256xf32>
    %cst_211 = arith.constant dense<0.000000e+00> : vector<256xf32>
    %294 = vector.multi_reduction <add>, %293, %cst_211 [0] : vector<2x256xf32> to vector<256xf32>
    %295 = vector.shape_cast %294 : vector<256xf32> to vector<1x256xf32>
    %cst_212 = arith.constant 2.000000e+00 : f32
    %296 = vector.broadcast %cst_212 : f32 to vector<1x256xf32>
    %297 = arith.divf %295, %296 : vector<1x256xf32>
    %298 = tpu.concatenate %292, %297 in 0 : vector<1x256xf32>, vector<1x256xf32> -> vector<2x256xf32>
    %c0_213 = arith.constant 0 : index
    %c0_214 = arith.constant 0 : index
    %299 = vector.load %arg5[%c0_213, %c0_214] : memref<256x10xf32, #tpu.memory_space<vmem>>, vector<256x10xf32>
    %cst_215 = arith.constant dense<0.000000e+00> : vector<2x10xf32>
    %300 = tpu.matmul %298, %299, %cst_215 {dimension_numbers = #tpu.dot_dimension_numbers<[1], [0], [0], [1], [0, 0, 1, 1], [], []>} : vector<2x256xf32>, vector<256x10xf32>, vector<2x10xf32> -> vector<2x10xf32>
    %301 = vector.broadcast %8 : vector<1x10xf32> to vector<2x10xf32>
    %302 = arith.addf %300, %301 : vector<2x10xf32>
    %c0_216 = arith.constant 0 : index
    %c0_217 = arith.constant 0 : index
    %303 = vector.load %arg6[%c0_216, %c0_217] : memref<2x10xf32, #tpu.memory_space<vmem>>, vector<2x10xf32>
    tpu.vector_store %arg6[%c0_216, %c0_217], %302 {strides = array<i32>} : memref<2x10xf32, #tpu.memory_space<vmem>>, vector<2x10xf32>,
    return
  }
}

</mosaic_0001>

<bundles_post_ra>
// kernel: forward.1
= control target key start
LH: loop header
LB: loop body
LE: loop exit
PB: predicated region body
PF: predicated region fallthrough
CT: control target
= control target key end

     0   :  { %vm226_vm0 = vcmask 465920   ;;  %s3734_s0 = inlined_call_operand.vmem [shape: f32[160,441], index: 0, kind: input, shape index: {}]   ;;  %s3735_s1 = inlined_call_operand.vmem [shape: f32[19,256], index: 1, kind: input, shape index: {}]   ;;  %s3736_s2 = inlined_call_operand.vmem [shape: f32[384,64], index: 2, kind: input, shape index: {}]   ;;  %s3737_s3 = inlined_call_operand.vmem [shape: f32[320,32], index: 3, kind: input, shape index: {}]   ;;  %s3738_s4 = inlined_call_operand.vmem [shape: f32[32,256], index: 4, kind: input, shape index: {}]   ;;  %s3739_s5 = inlined_call_operand.vmem [shape: f32[256,10], index: 5, kind: input, shape index: {}]   ;;  %s3740_s6 = inlined_call_operand.hbm [shape: f32[2,10], index: 6, kind: output, shape index: {}]  }
   0x1   :  { %v36_v0 = vld [vmem:[%s3734_s0 + $0x40] sm:$0xff]  ;;  %v68_v1 = vld [vmem:[%s3734_s0 + $0x48] sm:$0xff]  ;;  %v116_v2 = vld [vmem:[%s3734_s0 + $0x50] sm:$0xff] }
   0x2   :  { %v52_v3 = vand.u32 2147483647, %v36_v0  ;;  %v84_v4 = vand.u32 2147483647, %v68_v1  ;;  %v132_v5 = vand.u32 2147483647, %v116_v2 }
   0x3   :  { %v34_v6 = vld [vmem:[%s3734_s0] sm:$0xff]  ;;  %v66_v7 = vld [vmem:[%s3734_s0 + $0x8] sm:$0xff]  ;;  %v114_v8 = vld [vmem:[%s3734_s0 + $0x10] sm:$0xff] }
   0x4   :  { %v100_v9 = vmax.f32.f32 %v52_v3, %v84_v4  ;;  %v50_v10 = vand.u32 2147483647, %v34_v6  ;;  %v82_v11 = vand.u32 2147483647, %v66_v7  ;;  %v130_v12 = vand.u32 2147483647, %v114_v8 }
   0x5   :  { %v37_v13 = vld [vmem:[%s3734_s0 + $0x60] sm:$0xff]  ;;  %v69_v14 = vld [vmem:[%s3734_s0 + $0x68] sm:$0xff]  ;;  %v117_v15 = vld [vmem:[%s3734_s0 + $0x70] sm:$0xff] }
   0x6   :  { %v148_v16 = vmax.f32.f32 %v100_v9, %v132_v5  ;;  %v98_v17 = vmax.f32.f32 %v50_v10, %v82_v11  ;;  %v53_v18 = vand.u32 2147483647, %v37_v13  ;;  %v85_v19 = vand.u32 2147483647, %v69_v14  ;;  %v35_v20 = vld [vmem:[%s3734_s0 + $0x20] sm:$0xff]  ;;  %v67_v21 = vld [vmem:[%s3734_s0 + $0x28] sm:$0xff] }
   0x7   :  { %v133_v22 = vand.u32 2147483647, %v117_v15  ;;  %v51_v23 = vand.u32 2147483647, %v35_v20  ;;  %v83_v24 = vand.u32 2147483647, %v67_v21 }
   0x8   :  { %166 = vmax.xlane.f32.xlu1 %v148_v16  ;;  %v146_v25 = vmax.f32.f32 %v98_v17, %v130_v12  ;;  %v101_v26 = vmax.f32.f32 %v53_v18, %v85_v19  ;;  %v115_v27 = vld [vmem:[%s3734_s0 + $0x30] sm:$0xff]  ;;  %v40_v28 = vld [vmem:[%s3734_s0 + $0xc0] sm:$0xff]  ;;  %v72_v29 = vld [vmem:[%s3734_s0 + $0xc8] sm:$0xff] }
   0x9   :  { %v99_v30 = vmax.f32.f32 %v51_v23, %v83_v24  ;;  %v131_v31 = vand.u32 2147483647, %v115_v27  ;;  %v56_v32 = vand.u32 2147483647, %v40_v28  ;;  %v88_v33 = vand.u32 2147483647, %v72_v29 }
   0xa   :  { %162 = vmax.xlane.f32.xlu0 %v146_v25  ;;  %v149_v34 = vmax.f32.f32 %v101_v26, %v133_v22  ;;  %v120_v35 = vld [vmem:[%s3734_s0 + $0xd0] sm:$0xff]  ;;  %v39_v36 = vld [vmem:[%s3734_s0 + $0xa0] sm:$0xff]  ;;  %v71_v37 = vld [vmem:[%s3734_s0 + $0xa8] sm:$0xff] }
   0xb   :  { %v147_v38 = vmax.f32.f32 %v99_v30, %v131_v31  ;;  %v104_v39 = vmax.f32.f32 %v56_v32, %v88_v33  ;;  %v136_v40 = vand.u32 2147483647, %v120_v35  ;;  %v55_v41 = vand.u32 2147483647, %v39_v36  ;;  %v119_v42 = vld [vmem:[%s3734_s0 + $0xb0] sm:$0xff]  ;;  %v42_v43 = vld [vmem:[%s3734_s0 + $0x100] sm:$0xff] }
   0xc   :  { %168 = vmax.xlane.f32.xlu1 %v149_v34  ;;  %v87_v44 = vand.u32 2147483647, %v71_v37  ;;  %v135_v45 = vand.u32 2147483647, %v119_v42  ;;  %v58_v46 = vand.u32 2147483647, %v42_v43 }
   0xd   :  { %v152_v47 = vmax.f32.f32 %v104_v39, %v136_v40  ;;  %v74_v48 = vld [vmem:[%s3734_s0 + $0x108] sm:$0xff]  ;;  %v122_v49 = vld [vmem:[%s3734_s0 + $0x110] sm:$0xff]  ;;  %v41_v50 = vld [vmem:[%s3734_s0 + $0xe0] sm:$0xff] }
   0xe   :  { %164 = vmax.xlane.f32.xlu0 %v147_v38  ;;  %v103_v51 = vmax.f32.f32 %v55_v41, %v87_v44  ;;  %v90_v52 = vand.u32 2147483647, %v74_v48  ;;  %v138_v53 = vand.u32 2147483647, %v122_v49  ;;  %v57_v54 = vand.u32 2147483647, %v41_v50 }
   0xf   :  { %v73_v55 = vld [vmem:[%s3734_s0 + $0xe8] sm:$0xff]  ;;  %v121_v56 = vld [vmem:[%s3734_s0 + $0xf0] sm:$0xff]  ;;  %v45_v57 = vld [vmem:[%s3734_s0 + $0x160] sm:$0xff] }
  0x10   :  { %174 = vmax.xlane.f32.xlu1 %v152_v47  ;;  %v151_v58 = vmax.f32.f32 %v103_v51, %v135_v45  ;;  %v106_v59 = vmax.f32.f32 %v58_v46, %v90_v52  ;;  %v89_v60 = vand.u32 2147483647, %v73_v55  ;;  %v137_v61 = vand.u32 2147483647, %v121_v56  ;;  %v77_v62 = vld [vmem:[%s3734_s0 + $0x168] sm:$0xff]  ;;  %v125_v63 = vld [vmem:[%s3734_s0 + $0x170] sm:$0xff] }
  0x11   :  { %v61_v0 = vand.u32 2147483647, %v45_v57  ;;  %v93_v1 = vand.u32 2147483647, %v77_v62  ;;  %v141_v2 = vand.u32 2147483647, %v125_v63 }
  0x12   :  { %172 = vmax.xlane.f32.xlu0 %v151_v58  ;;  %v154_v3 = vmax.f32.f32 %v106_v59, %v138_v53  ;;  %v105_v4 = vmax.f32.f32 %v57_v54, %v89_v60  ;;  %v44_v5 = vld [vmem:[%s3734_s0 + $0x140] sm:$0xff]  ;;  %v76_v6 = vld [vmem:[%s3734_s0 + $0x148] sm:$0xff]  ;;  %v124_v7 = vld [vmem:[%s3734_s0 + $0x150] sm:$0xff] }
  0x13   :  { %v109_v8 = vmax.f32.f32 %v61_v0, %v93_v1  ;;  %v60_v9 = vand.u32 2147483647, %v44_v5  ;;  %v92_v10 = vand.u32 2147483647, %v76_v6  ;;  %v140_v11 = vand.u32 2147483647, %v124_v7 }
  0x14   :  { %178 = vmax.xlane.f32.xlu1 %v154_v3  ;;  %v153_v12 = vmax.f32.f32 %v105_v4, %v137_v61  ;;  %v47_v13 = vld [vmem:[%s3734_s0 + $0x1a0] sm:$0xff]  ;;  %v79_v14 = vld [vmem:[%s3734_s0 + $0x1a8] sm:$0xff]  ;;  %v127_v15 = vld [vmem:[%s3734_s0 + $0x1b0] sm:$0xff] }
  0x15   :  { %v157_v16 = vmax.f32.f32 %v109_v8, %v141_v2  ;;  %v108_v17 = vmax.f32.f32 %v60_v9, %v92_v10  ;;  %v63_v18 = vand.u32 2147483647, %v47_v13  ;;  %v95_v19 = vand.u32 2147483647, %v79_v14  ;;  %v46_v20 = vld [vmem:[%s3734_s0 + $0x180] sm:$0xff]  ;;  %v78_v21 = vld [vmem:[%s3734_s0 + $0x188] sm:$0xff] }
  0x16   :  { %176 = vmax.xlane.f32.xlu0 %v153_v12  ;;  %v143_v22 = vand.u32 2147483647, %v127_v15  ;;  %v62_v23 = vand.u32 2147483647, %v46_v20  ;;  %v94_v24 = vand.u32 2147483647, %v78_v21 }
  0x17   :  { %v156_v25 = vmax.f32.f32 %v108_v17, %v140_v11  ;;  %v111_v26 = vmax.f32.f32 %v63_v18, %v95_v19  ;;  %v126_v27 = vld [vmem:[%s3734_s0 + $0x190] sm:$0xff]  ;;  %v194_v28 = vld [vmem:[%s3734_s0 + $0x18] sm:$0xff]  ;;  %v49_v29 = vld [vmem:[%s3734_s0 + $0x1e0] sm:$0xff] }
  0x18   :  { %184 = vmax.xlane.f32.xlu1 %v157_v16  ;;  %v110_v30 = vmax.f32.f32 %v62_v23, %v94_v24  ;;  %v142_v31 = vand.u32 2147483647, %v126_v27  ;;  %v65_v32 = vand.u32 2147483647, %v49_v29  ;;  %v210_v34 = vand.u32 2147483647, %v194_v28 }
  0x19   :  { %v159_v33 = vmax.f32.f32 %v111_v26, %v143_v22  ;;  %v81_v35 = vld [vmem:[%s3734_s0 + $0x1e8] sm:$0xff]  ;;  %v129_v36 = vld [vmem:[%s3734_s0 + $0x1f0] sm:$0xff]  ;;  %v196_v40 = vld [vmem:[%s3734_s0 + $0x58] sm:$0xff] }
  0x1a   :  { %182 = vmax.xlane.f32.xlu0 %v156_v25  ;;  %v158_v37 = vmax.f32.f32 %v110_v30, %v142_v31  ;;  %v97_v38 = vand.u32 2147483647, %v81_v35  ;;  %v145_v39 = vand.u32 2147483647, %v129_v36  ;;  %v195_v42 = vld [vmem:[%s3734_s0 + $0x38] sm:$0xff]  ;;  %v227_v43 = vsel %vm226_vm0, %v210_v34, -inf }
  0x1b   :  { %v212_v44 = vand.u32 2147483647, %v196_v40  ;;  %v199_v46 = vld [vmem:[%s3734_s0 + $0xb8] sm:$0xff]  ;;  %v211_v47 = vand.u32 2147483647, %v195_v42  ;;  %v309_v5 = vld [vmem:[%s3734_s0 + $0x220] sm:$0xff] }
  0x1c   :  { %188 = vmax.xlane.f32.xlu1 %v159_v33  ;;  %v113_v41 = vmax.f32.f32 %v65_v32, %v97_v38  ;;  %v197_v48 = vld [vmem:[%s3734_s0 + $0x78] sm:$0xff]  ;;  %v215_v50 = vand.u32 2147483647, %v199_v46  ;;  %v317_v6 = vld [vmem:[%s3734_s0 + $0x228] sm:$0xff]  ;;  %v308_v10 = vld [vmem:[%s3734_s0 + $0x200] sm:$0xff] }
  0x1d   :  { %v233_v49 = vsel %vm226_vm0, %v212_v44, -inf  ;;  %v201_v51 = vld [vmem:[%s3734_s0 + $0xf8] sm:$0xff]  ;;  %v230_v52 = vsel %vm226_vm0, %v211_v47, -inf  ;;  %v213_v53 = vand.u32 2147483647, %v197_v48  ;;  %v316_v11 = vld [vmem:[%s3734_s0 + $0x208] sm:$0xff] }
  0x1e   :  { %186 = vmax.xlane.f32.xlu0 %v158_v37  ;;  %v161_v45 = vmax.f32.f32 %v113_v41, %v145_v39  ;;  %v200_v54 = vld [vmem:[%s3734_s0 + $0xd8] sm:$0xff]  ;;  %v242_v55 = vsel %vm226_vm0, %v215_v50, -inf  ;;  %v217_v56 = vand.u32 2147483647, %v201_v51  ;;  %v313_v13 = vand.u32 2147483647, %v309_v5 }
  0x1f   :  { %v204_v57 = vld [vmem:[%s3734_s0 + $0x158] sm:$0xff]  ;;  %v236_v58 = vsel %vm226_vm0, %v213_v53, -inf  ;;  %v216_v59 = vand.u32 2147483647, %v200_v54  ;;  %v321_v14 = vand.u32 2147483647, %v317_v6 }
  0x20   :  { %228 = vmax.xlane.f32.xlu1 %v227_v43  ;;  %v202_v60 = vld [vmem:[%s3734_s0 + $0x118] sm:$0xff]  ;;  %v248_v61 = vsel %vm226_vm0, %v217_v56, -inf  ;;  %v220_v62 = vand.u32 2147483647, %v204_v57  ;;  %v329_v17 = vld [vmem:[%s3734_s0 + $0x230] sm:$0xff]  ;;  %v310_v23 = vld [vmem:[%s3734_s0 + $0x240] sm:$0xff] }
  0x21   :  { %v206_v63 = vld [vmem:[%s3734_s0 + $0x198] sm:$0xff]  ;;  %v245_v0 = vsel %vm226_vm0, %v216_v59, -inf  ;;  %v218_v1 = vand.u32 2147483647, %v202_v60  ;;  %v312_v18 = vand.u32 2147483647, %v308_v10  ;;  %v325_v25 = vmax.f32.f32 %v313_v13, %v321_v14 }
  0x22   :  { %192 = vmax.xlane.f32.xlu0 %v161_v45  ;;  %v205_v2 = vld [vmem:[%s3734_s0 + $0x178] sm:$0xff]  ;;  %v257_v3 = vsel %vm226_vm0, %v220_v62, -inf  ;;  %v222_v4 = vand.u32 2147483647, %v206_v63  ;;  %v320_v19 = vand.u32 2147483647, %v316_v11 }
  0x23   :  { %v209_v7 = vld [vmem:[%s3734_s0 + $0x1f8] sm:$0xff]  ;;  %v251_v8 = vsel %vm226_vm0, %v218_v1, -inf  ;;  %v221_v9 = vand.u32 2147483647, %v205_v2  ;;  %v328_v20 = vld [vmem:[%s3734_s0 + $0x210] sm:$0xff]  ;;  %v318_v24 = vld [vmem:[%s3734_s0 + $0x248] sm:$0xff] }
  0x24   :  { %234 = vmax.xlane.f32.xlu1 %v233_v49  ;;  %v207_v12 = vld [vmem:[%s3734_s0 + $0x1b8] sm:$0xff]  ;;  %v263_v15 = vsel %vm226_vm0, %v222_v4, -inf  ;;  %v225_v16 = vand.u32 2147483647, %v209_v7  ;;  %v333_v26 = vand.u32 2147483647, %v329_v17 }
  0x25   :  { %v260_v21 = vsel %vm226_vm0, %v221_v9, -inf  ;;  %v223_v22 = vand.u32 2147483647, %v207_v12 }
  0x26   :  { %231 = vmax.xlane.f32.xlu0 %v230_v52 }
  0x28   :  { %243 = vmax.xlane.f32.xlu1 %v242_v55 }
  0x2a   :  { %237 = vmax.xlane.f32.xlu0 %v236_v58 }
  0x2c   :  { %249 = vmax.xlane.f32.xlu1 %v248_v61 }
  0x2e   :  { %246 = vmax.xlane.f32.xlu0 %v245_v0 }
  0x30   :  { %258 = vmax.xlane.f32.xlu1 %v257_v3 }
  0x32   :  { %252 = vmax.xlane.f32.xlu0 %v251_v8 }
  0x34   :  { %264 = vmax.xlane.f32.xlu1 %v263_v15 }
  0x35   :  { %11 = vsyncpa [#allocation6], 0  ;;  %v272_v27 = vsel %vm226_vm0, %v225_v16, -inf  ;;  %v332_v28 = vand.u32 2147483647, %v328_v20  ;;  %v324_v29 = vmax.f32.f32 %v312_v18, %v320_v19  ;;  %v348_v30 = vld [vmem:[%s3734_s0 + $0x218] sm:$0xff]  ;;  %v337_v35 = vmax.f32.f32 %v325_v25, %v333_v26 }
  0x36   :  { %261 = vmax.xlane.f32.xlu0 %v260_v21  ;;  %v314_v31 = vand.u32 2147483647, %v310_v23  ;;  %v322_v32 = vand.u32 2147483647, %v318_v24  ;;  %v266_v33 = vsel %vm226_vm0, %v223_v22, -inf  ;;  %v330_v34 = vld [vmem:[%s3734_s0 + $0x250] sm:$0xff] }
  0x37   :  { %v352_v36 = vand.u32 2147483647, %v348_v30  ;;  %v43_v37 = vld [vmem:[%s3734_s0 + $0x120] sm:$0xff]  ;;  %v75_v38 = vld [vmem:[%s3734_s0 + $0x128] sm:$0xff]  ;;  %v336_v39 = vmax.f32.f32 %v324_v29, %v332_v28  ;;  %v334_v41 = vand.u32 2147483647, %v330_v34 }
  0x38   :  { %273 = vmax.xlane.f32.xlu1 %v272_v27  ;;  %v326_v40 = vmax.f32.f32 %v314_v31, %v322_v32  ;;  %v350_v42 = vld [vmem:[%s3734_s0 + $0x258] sm:$0xff]  ;;  %v38_v43 = vld [vmem:[%s3734_s0 + $0x80] sm:$0xff]  ;;  %v70_v44 = vld [vmem:[%s3734_s0 + $0x88] sm:$0xff]  ;;  %v59_v46 = vand.u32 2147483647, %v43_v37  ;;  %v2790_v6 = vmov 0  }
  0x39   :  { %v349_v45 = vld [vmem:[%s3734_s0 + $0x238] sm:$0xff]  ;;  %v91_v47 = vand.u32 2147483647, %v75_v38  ;;  %v356_v48 = vsel %vm226_vm0, %v352_v36, -inf  ;;  %v354_v49 = vand.u32 2147483647, %v350_v42  ;;  %2762 = vset.pattern.permute.xlu0 %v2790_v6  ;;  %2763 = vset.pattern.permute.xlu1 %v2790_v6 }
  0x3a   :  { %267 = vmax.xlane.f32.xlu0 %v266_v33  ;;  %v123_v50 = vld [vmem:[%s3734_s0 + $0x130] sm:$0xff]  ;;  %v338_v51 = vmax.f32.f32 %v326_v40, %v334_v41  ;;  %v54_v52 = vand.u32 2147483647, %v38_v43  ;;  %v86_v53 = vand.u32 2147483647, %v70_v44  ;;  %v48_v56 = vld [vmem:[%s3734_s0 + $0x1c0] sm:$0xff] }
  0x3b   :  { %v118_v54 = vld [vmem:[%s3734_s0 + $0x90] sm:$0xff]  ;;  %v353_v55 = vand.u32 2147483647, %v349_v45  ;;  %v80_v57 = vld [vmem:[%s3734_s0 + $0x1c8] sm:$0xff]  ;;  %v107_v58 = vmax.f32.f32 %v59_v46, %v91_v47  ;;  %v139_v59 = vand.u32 2147483647, %v123_v50 }
  0x3c   :  { %342 = vmax.xlane.f32.xlu1 %v337_v35  ;;  %v362_v60 = vsel %vm226_vm0, %v354_v49, -inf  ;;  %v134_v61 = vand.u32 2147483647, %v118_v54  ;;  %v102_v62 = vmax.f32.f32 %v54_v52, %v86_v53  ;;  %v198_v63 = vld [vmem:[%s3734_s0 + $0x98] sm:$0xff]  ;;  %v64_v0 = vand.u32 2147483647, %v48_v56 }
  0x3d   :  { %v96_v1 = vand.u32 2147483647, %v80_v57  ;;  %v359_v2 = vsel %vm226_vm0, %v353_v55, -inf  ;;  %v128_v3 = vld [vmem:[%s3734_s0 + $0x1d0] sm:$0xff]  ;;  %v155_v4 = vmax.f32.f32 %v107_v58, %v139_v59  ;;  %v214_v5 = vand.u32 2147483647, %v198_v63 }
  0x3e   :  { %340 = vmax.xlane.f32.xlu0 %v336_v39  ;;  %v150_v7 = vmax.f32.f32 %v102_v62, %v134_v61  ;;  %v144_v9 = vand.u32 2147483647, %v128_v3  ;;  %v208_v10 = vld [vmem:[%s3734_s0 + $0x1d8] sm:$0xff]  ;;  %v311_v11 = vld [vmem:[%s3734_s0 + $0x260] sm:$0xff]  ;;  %v319_v12 = vld [vmem:[%s3734_s0 + $0x268] sm:$0xff]  ;;  %vm291_vm1 = vcmask 7168  }
  0x3f   :  { %v112_v8 = vmax.f32.f32 %v64_v0, %v96_v1  ;;  %v203_v13 = vld [vmem:[%s3734_s0 + $0x138] sm:$0xff]  ;;  %v239_v14 = vsel %vm226_vm0, %v214_v5, -inf  ;;  %v224_v15 = vand.u32 2147483647, %v208_v10  ;;  %v315_v18 = vand.u32 2147483647, %v311_v11 }
  0x40   :  { %357 = vmax.xlane.f32.xlu1 %v356_v48  ;;  %v351_v17 = vld [vmem:[%s3734_s0 + $0x278] sm:$0xff]  ;;  %v323_v19 = vand.u32 2147483647, %v319_v12  ;;  %v219_v20 = vand.u32 2147483647, %v203_v13  ;;  %v331_v21 = vld [vmem:[%s3734_s0 + $0x270] sm:$0xff] }
  0x41   :  { %v160_v16 = vmax.f32.f32 %v112_v8, %v144_v9  ;;  %v269_v22 = vsel %vm226_vm0, %v224_v15, -inf  ;;  %v355_v23 = vand.u32 2147483647, %v351_v17  ;;  %v335_v25 = vand.u32 2147483647, %v331_v21  ;;  %s2793_s17 = smov [#allocation5]  }
  0x42   :  { %344 = vmax.xlane.f32.xlu0 %v338_v51  ;;  %v327_v24 = vmax.f32.f32 %v315_v18, %v323_v19  ;;  %v254_v26 = vsel %vm226_vm0, %v219_v20, -inf  ;;  %vm605_vm2 = vcmask 257024   ;;  %vm2792_vm3 = vmmov 0   ;;  %s2364_s18 = sshll.u32 %s2793_s17, 4  ;;  %s2365_s18 = int_to_ptr.vmem [resolvable:$true] %s2364_s18 }
  0x43   :  { %v365_v27 = vsel %vm226_vm0, %v355_v23, -inf  ;;  %vm567_vm4 = vcmask 261120   ;;  %vm618_vm5 = vcmask 1041408   ;;  %vm1671_vm6 = vcmask 517120   ;;  %s2768_s19 = scalar_lea.vmem %s2365_s18, 32  ;;  %p2773_p1 = scmp.lt.s32.totalorder %s2365_s18, %s2365_s18 }
  0x44   :  { %363 = vmax.xlane.f32.xlu1 %v362_v60  ;;  %v339_v28 = vmax.f32.f32 %v327_v24, %v335_v25  ;;  %vm1707_vm7 = vcmask 523264   ;;  %vm1643_vm8 = vcmask 519168   ;;  %vm1676_vm9 = vcmask 519170   ;;  %p2769_p0 = scmp.ne.s32.totalorder %s2365_s18, %s2768_s19  ;;  %p2774_p2 = scmp.lt.s32.totalorder %s2768_s19, %s2768_s19 }
  0x45   :  { %vm2251_vm10 = vcmask 1040384   ;;  %vm2356_vm11 = vcmask 74752  }
  0x46   :  { %360 = vmax.xlane.f32.xlu0 %v359_v2  ;;  %p2775_p3 = por %p2774_p2, %p2773_p1 }
  0x48   :  { %180 = vmax.xlane.f32.xlu1 %v155_v4  ;;  %p2776_p4 = pnand %p2775_p3, %p2769_p0 }
  0x4a   :  { %170 = vmax.xlane.f32.xlu0 %v150_v7 }
  0x4c   :  { %240 = vmax.xlane.f32.xlu1 %v239_v14 }
  0x4e   :  { %190 = vmax.xlane.f32.xlu0 %v160_v16 }
  0x50   :  { %270 = vmax.xlane.f32.xlu1 %v269_v22 }
  0x52   :  { %255 = vmax.xlane.f32.xlu0 %v254_v26 }
  0x54   :  { %366 = vmax.xlane.f32.xlu1 %v365_v27 }
  0x56   :  { %346 = vmax.xlane.f32.xlu0 %v339_v28 }
  0x91   :  { %v167_v29 = vpop.xlane.xlu1 %166 }
  0x93   :  { %v163_v30 = vpop.xlane.xlu0 %162 }
  0x95   :  { %v169_v31 = vpop.xlane.xlu1 %168 }
  0x97   :  { %v165_v32 = vpop.xlane.xlu0 %164 }
  0x99   :  { %v175_v33 = vpop.xlane.xlu1 %174 }
  0x9b   :  { %v173_v34 = vpop.xlane.xlu0 %172 }
  0x9d   :  { %v179_v35 = vpop.xlane.xlu1 %178 }
  0x9f   :  { %v177_v36 = vpop.xlane.xlu0 %176 }
  0xa1   :  { %v185_v37 = vpop.xlane.xlu1 %184 }
  0xa3   :  { %v183_v38 = vpop.xlane.xlu0 %182 }
  0xa5   :  { %v189_v39 = vpop.xlane.xlu1 %188 }
  0xa7   :  { %v187_v40 = vpop.xlane.xlu0 %186 }
  0xa9   :  { %v229_v41 = vpop.xlane.xlu1 %228 }
  0xaa   :  { %v275_v42 = vmax.f32 %v163_v30, %v229_v41 }
  0xab   :  { %v193_v43 = vpop.xlane.xlu0 %192 }
  0xac   :  { %292 = vst.msk [vmem:[#allocation2] sm:$0xff] %vm291_vm1, %v275_v42 }
  0xad   :  { %v235_v44 = vpop.xlane.xlu1 %234 }
  0xae   :  { %v277_v45 = vmax.f32 %v167_v29, %v235_v44 }
  0xaf   :  { %v232_v46 = vpop.xlane.xlu0 %231 }
  0xb0   :  { %294 = vst.msk [vmem:[#allocation2 + $0x10] sm:$0xff] %vm291_vm1, %v277_v45  ;;  %v276_v47 = vmax.f32 %v165_v32, %v232_v46  ;;  %v635_v45 = vld [vmem:[%s3736_s2 + $0x38] sm:$0xff] }
  0xb1   :  { %v244_v48 = vpop.xlane.xlu1 %243  ;;  %v879_v46 = vld [vmem:[%s3736_s2 + $0x78] sm:$0xff] }
  0xb2   :  { %293 = vst.msk [vmem:[#allocation2 + $0x8] sm:$0xff] %vm291_vm1, %v276_v47  ;;  %v280_v49 = vmax.f32 %v173_v34, %v244_v48  ;;  %v2791_v47 = vmov 0.0   ;;  %v634_v48 = vld [vmem:[%s3736_s2 + $0x30] sm:$0xff] }
  0xb3   :  { %v238_v50 = vpop.xlane.xlu0 %237  ;;  %2531 = vmatprep.subr.mxu0 %v2791_v47  ;;  %2564 = vmatprep.subr.mxu1 %v2791_v47  ;;  %606 = vst.msk [vmem:[#allocation3] sm:$0xf] %vm605_vm2, %v2791_v47  ;;  %609 = vst.msk [vmem:[#allocation3 + $0x10] sm:$0xf] %vm605_vm2, %v2791_v47 }
  0xb4   :  { %297 = vst.msk [vmem:[#allocation2 + $0x28] sm:$0xff] %vm291_vm1, %v280_v49  ;;  %v278_v51 = vmax.f32 %v169_v31, %v238_v50  ;;  %v878_v49 = vld [vmem:[%s3736_s2 + $0x70] sm:$0xff]  ;;  %2532 = vmatpush3.msra.mxu0 %v635_v45  ;;  %2565 = vmatpush3.msra.mxu1 %v879_v46  ;;  %v633_v50 = vld [vmem:[%s3736_s2 + $0x28] sm:$0xff] }
  0xb5   :  { %v250_v52 = vpop.xlane.xlu1 %249  ;;  %608 = vst.msk [vmem:[#allocation3 + $0xc] sm:$0xf] %vm605_vm2, %v2791_v47  ;;  %611 = vst.msk [vmem:[#allocation3 + $0x1c] sm:$0xf] %vm605_vm2, %v2791_v47  ;;  %2533 = vmatprep.subr.mxu0 %v2791_v47  ;;  %2566 = vmatprep.subr.mxu1 %v2791_v47 }
  0xb6   :  { %295 = vst.msk [vmem:[#allocation2 + $0x18] sm:$0xff] %vm291_vm1, %v278_v51  ;;  %v282_v53 = vmax.f32 %v177_v36, %v250_v52  ;;  %v877_v51 = vld [vmem:[%s3736_s2 + $0x68] sm:$0xff]  ;;  %2534 = vmatpush3.msra.mxu0 %v634_v48  ;;  %2567 = vmatpush3.msra.mxu1 %v878_v49  ;;  %v632_v52 = vld [vmem:[%s3736_s2 + $0x20] sm:$0xff] }
  0xb7   :  { %v247_v54 = vpop.xlane.xlu0 %246  ;;  %2535 = vmatprep.subr.mxu0 %v2791_v47  ;;  %2568 = vmatprep.subr.mxu1 %v2791_v47  ;;  %1672 = vst.msk [vmem:[#allocation4] sm:$0x3] %vm1671_vm6, %v2791_v47  ;;  %1674 = vst.msk [vmem:[#allocation4 + $0x4] sm:$0x3] %vm1671_vm6, %v2791_v47 }
  0xb8   :  { %299 = vst.msk [vmem:[#allocation2 + $0x38] sm:$0xff] %vm291_vm1, %v282_v53  ;;  %v281_v55 = vmax.f32 %v175_v33, %v247_v54  ;;  %v876_v53 = vld [vmem:[%s3736_s2 + $0x60] sm:$0xff]  ;;  %2536 = vmatpush3.msra.mxu0 %v633_v50  ;;  %2569 = vmatpush3.msra.mxu1 %v877_v51 }
  0xb9   :  { %v259_v56 = vpop.xlane.xlu1 %258  ;;  %2537 = vmatprep.subr.mxu0 %v2791_v47  ;;  %2570 = vmatprep.subr.mxu1 %v2791_v47  ;;  %1675 = vst.msk [vmem:[#allocation4 + $0x6] sm:$0x3] %vm1671_vm6, %v2791_v47  ;;  %1678 = vst.msk [vmem:[#allocation4 + $0xa] sm:$0x3] %vm1671_vm6, %v2791_v47 }
  0xba   :  { %298 = vst.msk [vmem:[#allocation2 + $0x30] sm:$0xff] %vm291_vm1, %v281_v55  ;;  %v285_v57 = vmax.f32 %v183_v38, %v259_v56  ;;  %2538 = vmatpush3.msra.mxu0 %v632_v52  ;;  %2571 = vmatpush3.msra.mxu1 %v876_v53 }
  0xbb   :  { %v253_v58 = vpop.xlane.xlu0 %252  ;;  %2539 = vmatprep.mubr.msk.f32.mxu0 %vm2792_vm3, %v2791_v47  ;;  %2542 = vmatprep.subr.mxu0 %v2791_v47 }
  0xbc   :  { %302 = vst.msk [vmem:[#allocation2 + $0x50] sm:$0xff] %vm291_vm1, %v285_v57  ;;  %v283_v59 = vmax.f32 %v179_v35, %v253_v58  ;;  %2572 = vmatprep.mubr.msk.f32.mxu1 %vm2792_vm3, %v2791_v47  ;;  %2586 = vmatprep.subr.mxu1 %v2791_v47 }
  0xbd   :  { %v265_v60 = vpop.xlane.xlu1 %264 }
  0xbe   :  { %300 = vst.msk [vmem:[#allocation2 + $0x40] sm:$0xff] %vm291_vm1, %v283_v59  ;;  %v287_v61 = vmax.f32 %v187_v40, %v265_v60 }
  0xbf   :  { %v262_v62 = vpop.xlane.xlu0 %261 }
  0xc0   :  { %304 = vst.msk [vmem:[#allocation2 + $0x60] sm:$0xff] %vm291_vm1, %v287_v61  ;;  %v286_v63 = vmax.f32 %v185_v37, %v262_v62  ;;  %v398_v61 = vld [vmem:[%s3735_s1 + $0x12] ss:$0 sm:$0xff] }
  0xc1   :  { %v274_v0 = vpop.xlane.xlu1 %273 }
  0xc2   :  { %303 = vst.msk [vmem:[#allocation2 + $0x58] sm:$0xff] %vm291_vm1, %v286_v63  ;;  %v290_v1 = vmax.f32 %v193_v43, %v274_v0  ;;  %v379_v63 = vld [vmem:[%s3735_s1 + $0x11] ss:$0 sm:$0xff]  ;;  %v417_v0 = vld [vmem:[%s3735_s1 + $0x13] ss:$0 sm:$0xff] }
  0xc3   :  { %v268_v2 = vpop.xlane.xlu0 %267 }
  0xc4   :  { %307 = vst.msk [vmem:[#allocation2 + $0x78] sm:$0xff] %vm291_vm1, %v290_v1  ;;  %v288_v3 = vmax.f32 %v189_v39, %v268_v2 }
  0xc5   :  { %v376_v4 = vld [vmem:[#allocation2] ss:$10 sm:$0xff]  ;;  %v343_v5 = vpop.xlane.xlu1 %342  ;;  %v395_v24 = vld [vmem:[#allocation2 + $0x1] ss:$10 sm:$0xff] }
  0xc6   :  { %305 = vst.msk [vmem:[#allocation2 + $0x68] sm:$0xff] %vm291_vm1, %v288_v3  ;;  %382 = vperm.xlu0 %2762, %v376_v4  }
  0xc7   :  { %v341_v6 = vpop.xlane.xlu0 %340 }
  0xc9   :  { %v358_v7 = vpop.xlane.xlu1 %357 }
  0xca   :  { %v368_v8 = vmax.f32 %v341_v6, %v358_v7  ;;  %v455_v6 = vld [vmem:[%s3735_s1 + $0x15] ss:$0 sm:$0xff]  ;;  %v436_v7 = vld [vmem:[%s3735_s1 + $0x14] ss:$0 sm:$0xff] }
  0xcb   :  { %v345_v9 = vpop.xlane.xlu0 %344 }
  0xcc   :  { %372 = vst.msk [vmem:[#allocation2 + $0x80] sm:$0xff] %vm291_vm1, %v368_v8 }
  0xcd   :  { %v364_v10 = vpop.xlane.xlu1 %363 }
  0xce   :  { %v370_v11 = vmax.f32 %v345_v9, %v364_v10 }
  0xcf   :  { %v361_v12 = vpop.xlane.xlu0 %360 }
  0xd0   :  { %374 = vst.msk [vmem:[#allocation2 + $0x90] sm:$0xff] %vm291_vm1, %v370_v11  ;;  %v369_v13 = vmax.f32 %v343_v5, %v361_v12  ;;  %v474_v12 = vld [vmem:[%s3735_s1 + $0x16] ss:$0 sm:$0xff] }
  0xd1   :  { %v181_v14 = vpop.xlane.xlu1 %180 }
  0xd2   :  { %373 = vst.msk [vmem:[#allocation2 + $0x88] sm:$0xff] %vm291_vm1, %v369_v13 }
  0xd3   :  { %v171_v15 = vpop.xlane.xlu0 %170 }
  0xd5   :  { %v241_v16 = vpop.xlane.xlu1 %240 }
  0xd6   :  { %v279_v17 = vmax.f32 %v171_v15, %v241_v16  ;;  %v493_v15 = vld [vmem:[%s3735_s1 + $0x17] ss:$0 sm:$0xff] }
  0xd7   :  { %v191_v18 = vpop.xlane.xlu0 %190 }
  0xd8   :  { %296 = vst.msk [vmem:[#allocation2 + $0x20] sm:$0xff] %vm291_vm1, %v279_v17 }
  0xd9   :  { %v378_v19 = vld [vmem:[#allocation2 + $0x50] ss:$10 sm:$0xff]  ;;  %v271_v20 = vpop.xlane.xlu1 %270  ;;  %v397_v28 = vld [vmem:[#allocation2 + $0x51] ss:$10 sm:$0xff] }
  0xda   :  { %387 = vperm.xlu1 %2763, %v378_v19   ;;  %v289_v21 = vmax.f32 %v191_v18, %v271_v20 }
  0xdb   :  { %v256_v22 = vpop.xlane.xlu0 %255 }
  0xdc   :  { %306 = vst.msk [vmem:[#allocation2 + $0x70] sm:$0xff] %vm291_vm1, %v289_v21  ;;  %v284_v23 = vmax.f32 %v181_v14, %v256_v22 }
  0xdd   :  { %v367_v25 = vpop.xlane.xlu1 %366 }
  0xde   :  { %301 = vst.msk [vmem:[#allocation2 + $0x48] sm:$0xff] %vm291_vm1, %v284_v23  ;;  %401 = vperm.xlu1 %2763, %v395_v24   ;;  %v512_v23 = vld [vmem:[%s3735_s1 + $0x20] ss:$0 sm:$0xff] }
  0xdf   :  { %v347_v26 = vpop.xlane.xlu0 %346 }
  0xe0   :  { %v371_v27 = vmax.f32 %v347_v26, %v367_v25 }
  0xe2   :  { %375 = vst.msk [vmem:[#allocation2 + $0x98] sm:$0xff] %vm291_vm1, %v371_v27  ;;  %406 = vperm.xlu1 %2763, %v397_v28  }
  0xe5   :  { %v414_v29 = vld [vmem:[#allocation2 + $0x2] ss:$10 sm:$0xff]  ;;  %v433_v33 = vld [vmem:[#allocation2 + $0x3] ss:$10 sm:$0xff] }
  0xe6   :  { %420 = vperm.xlu1 %2763, %v414_v29   ;;  %v452_v37 = vld [vmem:[#allocation2 + $0x4] ss:$10 sm:$0xff]  ;;  %v471_v39 = vld [vmem:[#allocation2 + $0x5] ss:$10 sm:$0xff] }
  0xe7   :  { %v490_v41 = vld [vmem:[#allocation2 + $0x6] ss:$10 sm:$0xff]  ;;  %v509_v42 = vld [vmem:[#allocation2 + $0x7] ss:$10 sm:$0xff] }
  0xe8   :  { %v528_v43 = vld [vmem:[#allocation2 + $0x8] ss:$10 sm:$0xff]  ;;  %v547_v44 = vld [vmem:[#allocation2 + $0x9] ss:$10 sm:$0xff] }
  0xe9   :  { %v454_v30 = vld [vmem:[#allocation2 + $0x54] ss:$10 sm:$0xff]  ;;  %v473_v32 = vld [vmem:[#allocation2 + $0x55] ss:$10 sm:$0xff] }
  0xea   :  { %v416_v31 = vld [vmem:[#allocation2 + $0x52] ss:$10 sm:$0xff]  ;;  %463 = vperm.xlu0 %2762, %v454_v30   ;;  %v435_v35 = vld [vmem:[#allocation2 + $0x53] ss:$10 sm:$0xff] }
  0xeb   :  { %425 = vperm.xlu1 %2763, %v416_v31   ;;  %v492_v34 = vld [vmem:[#allocation2 + $0x56] ss:$10 sm:$0xff]  ;;  %v511_v36 = vld [vmem:[#allocation2 + $0x57] ss:$10 sm:$0xff] }
  0xec   :  { %v530_v38 = vld [vmem:[#allocation2 + $0x58] ss:$10 sm:$0xff]  ;;  %v549_v40 = vld [vmem:[#allocation2 + $0x59] ss:$10 sm:$0xff] }
  0xee   :  { %482 = vperm.xlu0 %2762, %v473_v32   ;;  %v531_v32 = vld [vmem:[%s3735_s1 + $0x21] ss:$0 sm:$0xff] }
  0xef   :  { %439 = vperm.xlu1 %2763, %v433_v33  }
  0xf2   :  { %501 = vperm.xlu0 %2762, %v492_v34  }
  0xf3   :  { %444 = vperm.xlu1 %2763, %v435_v35  }
  0xf6   :  { %520 = vperm.xlu0 %2762, %v511_v36  }
  0xf7   :  { %458 = vperm.xlu1 %2763, %v452_v37   ;;  %v550_v37 = vld [vmem:[%s3735_s1 + $0x22] ss:$0 sm:$0xff] }
  0xfa   :  { %539 = vperm.xlu0 %2762, %v530_v38  }
  0xfb   :  { %477 = vperm.xlu1 %2763, %v471_v39  }
  0xfe   :  { %558 = vperm.xlu0 %2762, %v549_v40  }
  0xff   :  { %496 = vperm.xlu1 %2763, %v490_v41  }
 0x103   :  { %515 = vperm.xlu1 %2763, %v509_v42  }
 0x107   :  { %534 = vperm.xlu1 %2763, %v528_v43  }
 0x10b   :  { %553 = vperm.xlu1 %2763, %v547_v44  }
 0x141   :  { %v383_v57 = vpop.permute.xlu0 %382 }
 0x142   :  { %v390_v26 = vmul.f32 %v383_v57, %v379_v63 }
 0x155   :  { %v388_v54 = vpop.permute.xlu1 %387 }
 0x156   :  { %v391_v3 = vmul.f32 %v388_v54, %v379_v63  ;;  %v24_v54 = vld [vmem:[%s3735_s1] ss:$0 sm:$0xff] }
 0x159   :  { %v402_v55 = vpop.permute.xlu1 %401 }
 0x15a   :  { %v409_v20 = vmul.f32 %v402_v55, %v398_v61 }
 0x15c   :  { %v411_v29 = vadd.f32 %v409_v20, %v390_v26  ;;  %v25_v26 = vld [vmem:[%s3735_s1 + $0x1] ss:$0 sm:$0xff] }
 0x15d   :  { %v407_v56 = vpop.permute.xlu1 %406 }
 0x15e   :  { %v410_v62 = vmul.f32 %v407_v56, %v398_v61 }
 0x160   :  { %v412_v5 = vadd.f32 %v410_v62, %v391_v3 }
 0x161   :  { %v421_v58 = vpop.permute.xlu1 %420 }
 0x162   :  { %v428_v27 = vmul.f32 %v421_v58, %v417_v0 }
 0x164   :  { %v430_v34 = vadd.f32 %v428_v27, %v411_v29  ;;  %v26_v29 = vld [vmem:[%s3735_s1 + $0x2] ss:$0 sm:$0xff] }
 0x165   :  { %v464_v60 = vpop.permute.xlu0 %463 }
 0x166   :  { %v426_v59 = vpop.permute.xlu1 %425  ;;  %v467_v13 = vmul.f32 %v464_v60, %v455_v6 }
 0x167   :  { %v429_v4 = vmul.f32 %v426_v59, %v417_v0 }
 0x169   :  { %v483_v2 = vpop.permute.xlu0 %482  ;;  %v431_v10 = vadd.f32 %v429_v4, %v412_v5 }
 0x16a   :  { %v440_v1 = vpop.permute.xlu1 %439  ;;  %v486_v18 = vmul.f32 %v483_v2, %v474_v12 }
 0x16b   :  { %v447_v30 = vmul.f32 %v440_v1, %v436_v7 }
 0x16d   :  { %v502_v9 = vpop.permute.xlu0 %501  ;;  %v449_v39 = vadd.f32 %v447_v30, %v430_v34 }
 0x16e   :  { %v445_v8 = vpop.permute.xlu1 %444  ;;  %v505_v22 = vmul.f32 %v502_v9, %v493_v15 }
 0x16f   :  { %v448_v11 = vmul.f32 %v445_v8, %v436_v7 }
 0x171   :  { %v450_v14 = vadd.f32 %v448_v11, %v431_v10  ;;  %v521_v17 = vpop.permute.xlu0 %520 }
 0x172   :  { %v459_v16 = vpop.permute.xlu1 %458  ;;  %v524_v31 = vmul.f32 %v521_v17, %v512_v23 }
 0x173   :  { %v469_v19 = vadd.f32 %v467_v13, %v450_v14  ;;  %v466_v35 = vmul.f32 %v459_v16, %v455_v6 }
 0x175   :  { %v488_v21 = vadd.f32 %v486_v18, %v469_v19  ;;  %v540_v25 = vpop.permute.xlu0 %539  ;;  %v468_v43 = vadd.f32 %v466_v35, %v449_v39 }
 0x176   :  { %v478_v24 = vpop.permute.xlu1 %477  ;;  %v543_v41 = vmul.f32 %v540_v25, %v531_v32 }
 0x177   :  { %v507_v28 = vadd.f32 %v505_v22, %v488_v21  ;;  %v485_v40 = vmul.f32 %v478_v24, %v474_v12 }
 0x179   :  { %v526_v36 = vadd.f32 %v524_v31, %v507_v28  ;;  %v559_v38 = vpop.permute.xlu0 %558  ;;  %v487_v48 = vadd.f32 %v485_v40, %v468_v43 }
 0x17a   :  { %v497_v33 = vpop.permute.xlu1 %496  ;;  %v562_v46 = vmul.f32 %v559_v38, %v550_v37  ;;  %v623_v38 = vld [vmem:[%s3736_s2 + $0x18] sm:$0xff] }
 0x17b   :  { %v545_v44 = vadd.f32 %v543_v41, %v526_v36  ;;  %v504_v45 = vmul.f32 %v497_v33, %v493_v15 }
 0x17d   :  { %v506_v51 = vadd.f32 %v504_v45, %v487_v48  ;;  %v564_v52 = vadd.f32 %v562_v46, %v545_v44  ;;  %v1051_v44 = vld [vmem:[%s3736_s2 + $0xb8] sm:$0xff]  ;;  %v622_v45 = vld [vmem:[%s3736_s2 + $0x10] sm:$0xff] }
 0x17e   :  { %v516_v42 = vpop.permute.xlu1 %515 }
 0x17f   :  { %v523_v49 = vmul.f32 %v516_v42, %v512_v23  ;;  %v566_v57 = vadd.f32 %v564_v52, %v24_v54  ;;  %v1049_v52 = vld [vmem:[%s3736_s2 + $0xa8] sm:$0xff] }
 0x181   :  { %v525_v55 = vadd.f32 %v523_v49, %v506_v51  ;;  %v580_v61 = vmul.f32 %v566_v57, %v566_v57  ;;  %v569_v63 = vsel %vm567_vm4, %v566_v57, 0.0  ;;  %v1050_v49 = vld [vmem:[%s3736_s2 + $0xb0] sm:$0xff] }
 0x182   :  { %v535_v50 = vpop.permute.xlu1 %534 }
 0x183   :  { %v542_v53 = vmul.f32 %v535_v50, %v531_v32  ;;  %v582_v3 = vsel %vm567_vm4, %v580_v61, 0.0  ;;  %v621_v50 = vld [vmem:[%s3736_s2 + $0x8] sm:$0xff] }
 0x185   :  { %v544_v58 = vadd.f32 %v542_v53, %v525_v55  ;;  %v620_v53 = vld [vmem:[%s3736_s2] sm:$0xff] }
 0x186   :  { %v554_v56 = vpop.permute.xlu1 %553 }
 0x187   :  { %v561_v59 = vmul.f32 %v554_v56, %v550_v37  ;;  %v1048_v56 = vld [vmem:[%s3736_s2 + $0xa0] sm:$0xff] }
 0x189   :  { %v563_v60 = vadd.f32 %v561_v59, %v544_v58 }
 0x18b   :  { %v565_v62 = vadd.f32 %v563_v60, %v24_v54  ;;  %v793_v60 = vld [vmem:[%s3736_s2 + $0x58] sm:$0xff] }
 0x18d   :  { %v568_v0 = vsel %vm567_vm4, %v565_v62, 0.0  ;;  %v579_v1 = vmul.f32 %v565_v62, %v565_v62 }
 0x18e   :  { %v570_v2 = vadd.f32 %v569_v63, %v568_v0  ;;  %v792_v63 = vld [vmem:[%s3736_s2 + $0x50] sm:$0xff] }
 0x18f   :  { %v581_v4 = vsel %vm567_vm4, %v579_v1, 0.0  ;;  %v1222_v0 = vld [vmem:[%s3736_s2 + $0xf0] sm:$0xff] }
 0x190   :  { %v571_v5 = vrot.slane %v570_v2, 4  ;;  %v583_v6 = vadd.f32 %v582_v3, %v581_v4  ;;  %v1221_v4 = vld [vmem:[%s3736_s2 + $0xe8] sm:$0xff] }
 0x192   :  { %v572_v7 = vadd.f32 %v571_v5, %v570_v2  ;;  %v584_v8 = vrot.slane %v583_v6, 4  ;;  %v791_v2 = vld [vmem:[%s3736_s2 + $0x48] sm:$0xff]  ;;  %v790_v5 = vld [vmem:[%s3736_s2 + $0x40] sm:$0xff] }
 0x194   :  { %v573_v9 = vrot.slane %v572_v7, 2  ;;  %v585_v10 = vadd.f32 %v584_v8, %v583_v6 }
 0x196   :  { %v574_v11 = vadd.f32 %v573_v9, %v572_v7  ;;  %v586_v12 = vrot.slane %v585_v10, 2  ;;  %v1220_v7 = vld [vmem:[%s3736_s2 + $0xe0] sm:$0xff] }
 0x198   :  { %v575_v13 = vrot.slane %v574_v11, 1  ;;  %v587_v14 = vadd.f32 %v586_v12, %v585_v10  ;;  %v965_v12 = vld [vmem:[%s3736_s2 + $0x98] sm:$0xff] }
 0x19a   :  { %v576_v15 = vadd.f32 %v575_v13, %v574_v11  ;;  %v588_v16 = vrot.slane %v587_v14, 1 }
 0x19c   :  { %v578_v17 = vmul.f32 0.0625, %v576_v15  ;;  %v589_v18 = vadd.f32 %v588_v16, %v587_v14  ;;  %v1395_v14 = vld [vmem:[%s3736_s2 + $0x138] sm:$0xff]  ;;  %v964_v15 = vld [vmem:[%s3736_s2 + $0x90] sm:$0xff] }
 0x19d   :  { %v1394_v16 = vld [vmem:[%s3736_s2 + $0x130] sm:$0xff] }
 0x19e   :  { %v590_v19 = vmul.f32 0.0625, %v589_v18  ;;  %v591_v20 = vmul.f32 %v578_v17, %v578_v17  ;;  %v593_v23 = vsub.f32 %v565_v62, %v578_v17  ;;  %v594_v24 = vsub.f32 %v566_v57, %v578_v17  ;;  %v1223_v62 = vld [vmem:[%s3736_s2 + $0xf8] sm:$0xff]  ;;  %v963_v18 = vld [vmem:[%s3736_s2 + $0x88] sm:$0xff] }
 0x1a0   :  { %v592_v21 = vsub.f32 %v590_v19, %v591_v20  ;;  %v1393_v20 = vld [vmem:[%s3736_s2 + $0x128] sm:$0xff] }
 0x1a2   :  { %v595_v22 = vadd.f32 1e-05, %v592_v21  ;;  %v962_v21 = vld [vmem:[%s3736_s2 + $0x80] sm:$0xff] }
 0x1a4   :  { %2764 = vrsqrt.f32 %v595_v22 }
 0x1b1   :  { %v2765_v25 = vpop.eup %2764 }
 0x1b2   :  { %v597_v27 = vmul.f32 %v2765_v25, %v593_v23  ;;  %v598_v28 = vmul.f32 %v2765_v25, %v594_v24  ;;  %v1392_v23 = vld [vmem:[%s3736_s2 + $0x120] sm:$0xff] }
 0x1b4   :  { %v599_v30 = vmul.f32 %v597_v27, %v25_v26  ;;  %v600_v31 = vmul.f32 %v598_v28, %v25_v26  ;;  %v1137_v28 = vld [vmem:[%s3736_s2 + $0xd8] sm:$0xff] }
 0x1b6   :  { %v601_v32 = vadd.f32 %v599_v30, %v26_v29  ;;  %v602_v33 = vadd.f32 %v600_v31, %v26_v29  ;;  %v1567_v30 = vld [vmem:[%s3736_s2 + $0x178] sm:$0xff]  ;;  %v1136_v31 = vld [vmem:[%s3736_s2 + $0xd0] sm:$0xff] }
 0x1b8   :  { %v603_v34 = vmax.f32 %v601_v32, 0.0  ;;  %v604_v35 = vmax.f32 %v602_v33, 0.0  ;;  %v1566_v32 = vld [vmem:[%s3736_s2 + $0x170] sm:$0xff] }
 0x1ba   :  { %607 = vst.msk [vmem:[#allocation3 + $0x4] sm:$0xff] %vm567_vm4, %v603_v34  ;;  %610 = vst.msk [vmem:[#allocation3 + $0x14] sm:$0xff] %vm567_vm4, %v604_v35  ;;  %v1135_v34 = vld [vmem:[%s3736_s2 + $0xc8] sm:$0xff] }
 0x1c1   :  { %v627_v36 = vld [vmem:[#allocation3 + $0x11] ss:$4 sm:$0x3]  ;;  %v625_v39 = vld [vmem:[#allocation3 + $0x1] ss:$4 sm:$0x3] }
 0x1c2   :  { %v629_v37 = vrot.slane %v627_v36, 6  ;;  %v871_v40 = vld [vmem:[#allocation3 + $0x13] ss:$4 sm:$0x3]  ;;  %v1565_v36 = vld [vmem:[%s3736_s2 + $0x168] sm:$0xff] }
 0x1c3   :  { %v873_v42 = vrot.slane %v871_v40, 6  ;;  %v869_v43 = vld [vmem:[#allocation3 + $0x3] ss:$4 sm:$0x3] }
 0x1c4   :  { %v631_v41 = vsel %vm618_vm5, %v625_v39, %v629_v37  ;;  %v614_v48 = vld [vmem:[#allocation3 + $0x10] ss:$4 sm:$0x3]  ;;  %v1043_v51 = vld [vmem:[#allocation3 + $0x15] ss:$4 sm:$0x3] }
 0x1c5   :  { %2540 = vmatmul.mubr.msk.f32.vlgmr.msra.gmra.mxu0 %vm567_vm4, %v631_v41  ;;  %v875_v46 = vsel %vm618_vm5, %v869_v43, %v873_v42  ;;  %v616_v54 = vrot.slane %v614_v48, 6  ;;  %v1045_v55 = vrot.slane %v1043_v51, 6  ;;  %v612_v57 = vld [vmem:[#allocation3] ss:$4 sm:$0x3] }
 0x1c6   :  { %2543 = vmatpush3.msra.mxu0 %v623_v38  ;;  %2550 = vmatprep.mubr.msk.f32.mxu0 %vm2792_vm3, %v2791_v47  ;;  %v1041_v59 = vld [vmem:[#allocation3 + $0x5] ss:$4 sm:$0x3]  ;;  %v785_v1 = vld [vmem:[#allocation3 + $0x12] ss:$4 sm:$0x3] }
 0x1c7   :  { %2573 = vmatmul.mubr.msk.f32.vlgmr.msra.gmra.mxu1 %vm567_vm4, %v875_v46  ;;  %2544 = vmatprep.subr.mxu0 %v2791_v47  ;;  %v619_v58 = vsel %vm618_vm5, %v612_v57, %v616_v54  ;;  %v1047_v61 = vsel %vm618_vm5, %v1041_v59, %v1045_v55  ;;  %v1215_v3 = vld [vmem:[#allocation3 + $0x17] ss:$4 sm:$0x3]  ;;  %v787_v6 = vrot.slane %v785_v1, 6  ;;  %v1134_v37 = vld [vmem:[%s3736_s2 + $0xc0] sm:$0xff]  ;;  %v1479_v57 = vld [vmem:[%s3736_s2 + $0x148] sm:$0xff] }
 0x1c8   :  { %2587 = vmatpush3.msra.mxu1 %v1051_v44  ;;  %2545 = vmatpush3.msra.mxu0 %v622_v45  ;;  %v1217_v8 = vrot.slane %v1215_v3, 6  ;;  %v783_v9 = vld [vmem:[#allocation3 + $0x2] ss:$4 sm:$0x3]  ;;  %v1309_v44 = vld [vmem:[%s3736_s2 + $0x118] sm:$0xff]  ;;  %v1308_v46 = vld [vmem:[%s3736_s2 + $0x110] sm:$0xff] }
 0x1c9   :  { %2588 = vmatprep.subr.mxu1 %v2791_v47  ;;  %2546 = vmatprep.subr.mxu0 %v2791_v47  ;;  %v789_v10 = vsel %vm618_vm5, %v783_v9, %v787_v6  ;;  %v1213_v11 = vld [vmem:[#allocation3 + $0x7] ss:$4 sm:$0x3]  ;;  %v957_v17 = vld [vmem:[#allocation3 + $0x14] ss:$4 sm:$0x3] }
 0x1ca   :  { %2589 = vmatpush3.msra.mxu1 %v1050_v49  ;;  %2547 = vmatpush3.msra.mxu0 %v621_v50  ;;  %v1219_v13 = vsel %vm618_vm5, %v1213_v11, %v1217_v8  ;;  %v1387_v19 = vld [vmem:[#allocation3 + $0x19] ss:$4 sm:$0x3]  ;;  %v959_v22 = vrot.slane %v957_v17, 6  ;;  %v1564_v39 = vld [vmem:[%s3736_s2 + $0x160] sm:$0xff]  ;;  %v1307_v49 = vld [vmem:[%s3736_s2 + $0x108] sm:$0xff] }
 0x1cb   :  { %2590 = vmatprep.subr.mxu1 %v2791_v47  ;;  %2548 = vmatprep.subr.mxu0 %v2791_v47  ;;  %v1389_v24 = vrot.slane %v1387_v19, 6  ;;  %v955_v25 = vld [vmem:[#allocation3 + $0x4] ss:$4 sm:$0x3]  ;;  %v1480_v55 = vld [vmem:[%s3736_s2 + $0x150] sm:$0xff]  ;;  %v1706_v6 = vld [vmem:[%s3737_s3 + $0x78] sm:$0xff] }
 0x1cc   :  { %2591 = vmatpush3.msra.mxu1 %v1049_v52  ;;  %2549 = vmatpush3.msra.mxu0 %v620_v53  ;;  %v961_v26 = vsel %vm618_vm5, %v955_v25, %v959_v22  ;;  %v1385_v27 = vld [vmem:[#allocation3 + $0x9] ss:$4 sm:$0x3]  ;;  %v1129_v33 = vld [vmem:[#allocation3 + $0x16] ss:$4 sm:$0x3] }
 0x1cd   :  { %2592 = vmatprep.subr.mxu1 %v2791_v47  ;;  %2594 = vmatprep.mubr.msk.f32.mxu1 %vm2792_vm3, %v2791_v47  ;;  %v1391_v29 = vsel %vm618_vm5, %v1385_v27, %v1389_v24  ;;  %v1559_v35 = vld [vmem:[#allocation3 + $0x1b] ss:$4 sm:$0x3]  ;;  %v1131_v38 = vrot.slane %v1129_v33, 6  ;;  %v1306_v51 = vld [vmem:[%s3736_s2 + $0x100] sm:$0xff]  ;;  %v1687_v3 = vld [vmem:[%s3737_s3 + $0x10] sm:$0xff] }
 0x1ce   :  { %2593 = vmatpush3.msra.mxu1 %v1048_v56  ;;  %2551 = vmatmul.mubr.msk.f32.vlgmr.msra.gmra.mxu0 %vm567_vm4, %v619_v58  ;;  %v1561_v40 = vrot.slane %v1559_v35, 6  ;;  %v1127_v41 = vld [vmem:[#allocation3 + $0x6] ss:$4 sm:$0x3]  ;;  %v1481_v53 = vld [vmem:[%s3736_s2 + $0x158] sm:$0xff]  ;;  %v1705_v9 = vld [vmem:[%s3737_s3 + $0x70] sm:$0xff] }
 0x1cf   :  { %2553 = vmatprep.subr.mxu0 %v2791_v47  ;;  %2595 = vmatmul.mubr.msk.f32.vlgmr.msra.gmra.mxu1 %vm567_vm4, %v1047_v61  ;;  %v1133_v42 = vsel %vm618_vm5, %v1127_v41, %v1131_v38  ;;  %v1557_v43 = vld [vmem:[#allocation3 + $0xb] ss:$4 sm:$0x3]  ;;  %v1301_v48 = vld [vmem:[#allocation3 + $0x18] ss:$4 sm:$0x3] }
 0x1d0   :  { %2608 = vmatprep.subr.mxu1 %v2791_v47  ;;  %2554 = vmatpush3.msra.mxu0 %v793_v60  ;;  %v1563_v45 = vsel %vm618_vm5, %v1557_v43, %v1561_v40  ;;  %v1303_v50 = vrot.slane %v1301_v48, 6  ;;  %v1299_v52 = vld [vmem:[#allocation3 + $0x8] ss:$4 sm:$0x3]  ;;  %v1478_v59 = vld [vmem:[%s3736_s2 + $0x140] sm:$0xff] }
 0x1d1   :  { %2609 = vmatpush3.msra.mxu1 %v1223_v62  ;;  %2555 = vmatprep.subr.mxu0 %v2791_v47  ;;  %v1473_v56 = vld [vmem:[#allocation3 + $0x1a] ss:$4 sm:$0x3]  ;;  %v1471_v60 = vld [vmem:[#allocation3 + $0xa] ss:$4 sm:$0x3] }
 0x1d2   :  { %2610 = vmatprep.subr.mxu1 %v2791_v47  ;;  %2556 = vmatpush3.msra.mxu0 %v792_v63  ;;  %v1305_v54 = vsel %vm618_vm5, %v1299_v52, %v1303_v50  ;;  %v1475_v58 = vrot.slane %v1473_v56, 6  ;;  %v1692_v62 = vld [vmem:[%s3737_s3 + $0x38] sm:$0xff]  ;;  %v1691_v63 = vld [vmem:[%s3737_s3 + $0x30] sm:$0xff]  ;;  %v1689_v1 = vld [vmem:[%s3737_s3 + $0x20] sm:$0xff] }
 0x1d3   :  { %2611 = vmatpush3.msra.mxu1 %v1222_v0  ;;  %2557 = vmatprep.subr.mxu0 %v2791_v47  ;;  %v1690_v0 = vld [vmem:[%s3737_s3 + $0x28] sm:$0xff]  ;;  %v1680_v8 = vld [vmem:[#allocation4 + $0x6] sm:$0x3] }
 0x1d4   :  { %2612 = vmatprep.subr.mxu1 %v2791_v47  ;;  %2558 = vmatpush3.msra.mxu0 %v791_v2  ;;  %v1477_v61 = vsel %vm618_vm5, %v1471_v60, %v1475_v58  ;;  %v1688_v2 = vld [vmem:[%s3737_s3 + $0x18] sm:$0xff]  ;;  %v1704_v11 = vld [vmem:[%s3737_s3 + $0x68] sm:$0xff]  ;;  %v1952_v19 = vld [vmem:[%s3737_s3 + $0xe0] sm:$0xff] }
 0x1d5   :  { %2613 = vmatpush3.msra.mxu1 %v1221_v4  ;;  %2559 = vmatprep.subr.mxu0 %v2791_v47  ;;  %v1686_v4 = vld [vmem:[%s3737_s3 + $0x8] sm:$0xff]  ;;  %v1699_v22 = vld [vmem:[%s3737_s3 + $0x40] sm:$0xff] }
 0x1d6   :  { %2614 = vmatprep.subr.mxu1 %v2791_v47  ;;  %2560 = vmatpush3.msra.mxu0 %v790_v5  ;;  %v1685_v5 = vld [vmem:[%s3737_s3] sm:$0xff]  ;;  %v1953_v17 = vld [vmem:[%s3737_s3 + $0xe8] sm:$0xff] }
 0x1d7   :  { %2561 = vmatprep.mubr.msk.f32.mxu0 %vm2792_vm3, %v2791_v47  ;;  %2615 = vmatpush3.msra.mxu1 %v1220_v7  ;;  %v1679_v7 = vld [vmem:[#allocation4] sm:$0x3]  ;;  %v1949_v24 = vld [vmem:[%s3737_s3 + $0xc8] sm:$0xff]  ;;  %v27_v60 = vld [vmem:[%s3735_s1 + $0x3] ss:$0 sm:$0xff] }
 0x1d8   :  { %2616 = vmatprep.mubr.msk.f32.mxu1 %vm2792_vm3, %v2791_v47  ;;  %2562 = vmatmul.mubr.msk.f32.vlgmr.msra.gmra.mxu0 %vm567_vm4, %v789_v10  ;;  %v1682_v10 = vrot.slane %v1680_v8, 6  ;;  %v1948_v25 = vld [vmem:[%s3737_s3 + $0xc0] sm:$0xff] }
 0x1d9   :  { %2575 = vmatprep.subr.mxu0 %v2791_v47  ;;  %2617 = vmatmul.mubr.msk.f32.vlgmr.msra.gmra.mxu1 %vm567_vm4, %v1219_v13 }
 0x1da   :  { %2630 = vmatprep.subr.mxu1 %v2791_v47  ;;  %2576 = vmatpush3.msra.mxu0 %v965_v12  ;;  %v1955_v12 = vld [vmem:[%s3737_s3 + $0xf8] sm:$0xff]  ;;  %v1684_v13 = vsel %vm618_vm5, %v1679_v7, %v1682_v10 }
 0x1db   :  { %2631 = vmatpush3.msra.mxu1 %v1395_v14  ;;  %2577 = vmatprep.subr.mxu0 %v2791_v47  ;;  %v1703_v14 = vld [vmem:[%s3737_s3 + $0x60] sm:$0xff] }
 0x1dc   :  { %2632 = vmatprep.subr.mxu1 %v2791_v47  ;;  %2578 = vmatpush3.msra.mxu0 %v964_v15  ;;  %v1954_v15 = vld [vmem:[%s3737_s3 + $0xf0] sm:$0xff] }
 0x1dd   :  { %2633 = vmatpush3.msra.mxu1 %v1394_v16  ;;  %2579 = vmatprep.subr.mxu0 %v2791_v47  ;;  %v1702_v16 = vld [vmem:[%s3737_s3 + $0x58] sm:$0xff] }
 0x1de   :  { %2634 = vmatprep.subr.mxu1 %v2791_v47  ;;  %2580 = vmatpush3.msra.mxu0 %v963_v18  ;;  %v1701_v18 = vld [vmem:[%s3737_s3 + $0x50] sm:$0xff] }
 0x1df   :  { %2635 = vmatpush3.msra.mxu1 %v1393_v20  ;;  %2581 = vmatprep.subr.mxu0 %v2791_v47  ;;  %v1700_v20 = vld [vmem:[%s3737_s3 + $0x48] sm:$0xff] }
 0x1e0   :  { %2636 = vmatprep.subr.mxu1 %v2791_v47  ;;  %2582 = vmatpush3.msra.mxu0 %v962_v21  ;;  %v1951_v21 = vld [vmem:[%s3737_s3 + $0xd8] sm:$0xff] }
 0x1e1   :  { %2583 = vmatprep.mubr.msk.f32.mxu0 %vm2792_vm3, %v2791_v47  ;;  %2637 = vmatpush3.msra.mxu1 %v1392_v23  ;;  %v1950_v23 = vld [vmem:[%s3737_s3 + $0xd0] sm:$0xff] }
 0x1e2   :  { %2638 = vmatprep.mubr.msk.f32.mxu1 %vm2792_vm3, %v2791_v47  ;;  %2584 = vmatmul.mubr.msk.f32.vlgmr.msra.gmra.mxu0 %vm567_vm4, %v961_v26 }
 0x1e3   :  { %2597 = vmatprep.subr.mxu0 %v2791_v47  ;;  %2639 = vmatmul.mubr.msk.f32.vlgmr.msra.gmra.mxu1 %vm567_vm4, %v1391_v29 }
 0x1e4   :  { %2652 = vmatprep.subr.mxu1 %v2791_v47  ;;  %2598 = vmatpush3.msra.mxu0 %v1137_v28 }
 0x1e5   :  { %2653 = vmatpush3.msra.mxu1 %v1567_v30  ;;  %2599 = vmatprep.subr.mxu0 %v2791_v47 }
 0x1e6   :  { %2654 = vmatprep.subr.mxu1 %v2791_v47  ;;  %2600 = vmatpush3.msra.mxu0 %v1136_v31 }
 0x1e7   :  { %2655 = vmatpush3.msra.mxu1 %v1566_v32  ;;  %2601 = vmatprep.subr.mxu0 %v2791_v47 }
 0x1e8   :  { %2656 = vmatprep.subr.mxu1 %v2791_v47  ;;  %2602 = vmatpush3.msra.mxu0 %v1135_v34 }
 0x1e9   :  { %2657 = vmatpush3.msra.mxu1 %v1565_v36  ;;  %2603 = vmatprep.subr.mxu0 %v2791_v47 }
 0x1ea   :  { %2658 = vmatprep.subr.mxu1 %v2791_v47  ;;  %2604 = vmatpush3.msra.mxu0 %v1134_v37 }
 0x1eb   :  { %2605 = vmatprep.mubr.msk.f32.mxu0 %vm2792_vm3, %v2791_v47  ;;  %2659 = vmatpush3.msra.mxu1 %v1564_v39 }
 0x1ec   :  { %2660 = vmatprep.mubr.msk.f32.mxu1 %vm2792_vm3, %v2791_v47  ;;  %2606 = vmatmul.mubr.msk.f32.vlgmr.msra.gmra.mxu0 %vm567_vm4, %v1133_v42 }
 0x1ed   :  { %2619 = vmatprep.subr.mxu0 %v2791_v47  ;;  %2661 = vmatmul.mubr.msk.f32.vlgmr.msra.gmra.mxu1 %vm567_vm4, %v1563_v45 }
 0x1ee   :  { %2620 = vmatpush3.msra.mxu0 %v1309_v44  ;;  %2627 = vmatprep.mubr.msk.f32.mxu0 %vm2792_vm3, %v2791_v47 }
 0x1ef   :  { %2621 = vmatprep.subr.mxu0 %v2791_v47  ;;  %2682 = vmatprep.subr.mxu1 %v2791_v47 }
 0x1f0   :  { %2622 = vmatpush3.msra.mxu0 %v1308_v46  ;;  %2698 = vmatprep.mubr.msk.f32.mxu1 %vm2792_vm3, %v2791_v47 }
 0x1f1   :  { %2623 = vmatprep.subr.mxu0 %v2791_v47  ;;  %2683 = vmatpush3.msra.mxu1 %v1692_v62 }
 0x1f2   :  { %2624 = vmatpush3.msra.mxu0 %v1307_v49  ;;  %2684 = vmatprep.subr.mxu1 %v2791_v47 }
 0x1f3   :  { %2625 = vmatprep.subr.mxu0 %v2791_v47  ;;  %2685 = vmatpush3.msra.mxu1 %v1691_v63 }
 0x1f4   :  { %2626 = vmatpush3.msra.mxu0 %v1306_v51  ;;  %2686 = vmatprep.subr.mxu1 %v2791_v47 }
 0x1f5   :  { %2628 = vmatmul.mubr.msk.f32.vlgmr.msra.gmra.mxu0 %vm567_vm4, %v1305_v54  ;;  %2641 = vmatprep.subr.mxu0 %v2791_v47 }
 0x1f6   :  { %2642 = vmatpush3.msra.mxu0 %v1481_v53  ;;  %2649 = vmatprep.mubr.msk.f32.mxu0 %vm2792_vm3, %v2791_v47 }
 0x1f7   :  { %2643 = vmatprep.subr.mxu0 %v2791_v47  ;;  %2687 = vmatpush3.msra.mxu1 %v1690_v0 }
 0x1f8   :  { %2644 = vmatpush3.msra.mxu0 %v1480_v55  ;;  %2688 = vmatprep.subr.mxu1 %v2791_v47 }
 0x1f9   :  { %2645 = vmatprep.subr.mxu0 %v2791_v47  ;;  %2689 = vmatpush3.msra.mxu1 %v1689_v1 }
 0x1fa   :  { %2646 = vmatpush3.msra.mxu0 %v1479_v57  ;;  %2690 = vmatprep.subr.mxu1 %v2791_v47 }
 0x1fb   :  { %2647 = vmatprep.subr.mxu0 %v2791_v47  ;;  %2691 = vmatpush3.msra.mxu1 %v1688_v2 }
 0x1fc   :  { %2648 = vmatpush3.msra.mxu0 %v1478_v59  ;;  %2692 = vmatprep.subr.mxu1 %v2791_v47 }
 0x1fd   :  { %2650 = vmatmul.mubr.msk.f32.vlgmr.msra.gmra.mxu0 %vm567_vm4, %v1477_v61  ;;  %2663 = vmatprep.subr.mxu0 %v2791_v47 }
 0x1fe   :  { %2679 = vmatprep.mubr.msk.f32.mxu0 %vm2792_vm3, %v2791_v47  ;;  %2693 = vmatpush3.msra.mxu1 %v1687_v3 }
 0x1ff   :  { %2694 = vmatprep.subr.mxu1 %v2791_v47  ;;  %2664 = vmatpush3.msra.mxu0 %v1706_v6 }
 0x200   :  { %2695 = vmatpush3.msra.mxu1 %v1686_v4  ;;  %2665 = vmatprep.subr.mxu0 %v2791_v47 }
 0x201   :  { %2696 = vmatprep.subr.mxu1 %v2791_v47  ;;  %2666 = vmatpush3.msra.mxu0 %v1705_v9 }
 0x202   :  { %2697 = vmatpush3.msra.mxu1 %v1685_v5  ;;  %2667 = vmatprep.subr.mxu0 %v2791_v47 }
 0x203   :  { %2720 = vmatprep.subr.mxu1 %v2791_v47  ;;  %2699 = vmatmul.mubr.msk.f32.vlgmr.msra.gmra.mxu1 %vm1707_vm7, %v1684_v13 }
 0x204   :  { %2668 = vmatpush3.msra.mxu0 %v1704_v11  ;;  %2721 = vmatpush3.msra.mxu1 %v1955_v12 }
 0x205   :  { %2669 = vmatprep.subr.mxu0 %v2791_v47  ;;  %2722 = vmatprep.subr.mxu1 %v2791_v47 }
 0x206   :  { %2670 = vmatpush3.msra.mxu0 %v1703_v14  ;;  %2723 = vmatpush3.msra.mxu1 %v1954_v15 }
 0x207   :  { %2671 = vmatprep.subr.mxu0 %v2791_v47  ;;  %2724 = vmatprep.subr.mxu1 %v2791_v47 }
 0x208   :  { %2672 = vmatpush3.msra.mxu0 %v1702_v16  ;;  %2725 = vmatpush3.msra.mxu1 %v1953_v17 }
 0x209   :  { %2673 = vmatprep.subr.mxu0 %v2791_v47  ;;  %2726 = vmatprep.subr.mxu1 %v2791_v47 }
 0x20a   :  { %2674 = vmatpush3.msra.mxu0 %v1701_v18  ;;  %2727 = vmatpush3.msra.mxu1 %v1952_v19 }
 0x20b   :  { %2675 = vmatprep.subr.mxu0 %v2791_v47  ;;  %2728 = vmatprep.subr.mxu1 %v2791_v47 }
 0x20c   :  { %2676 = vmatpush3.msra.mxu0 %v1700_v20  ;;  %2729 = vmatpush3.msra.mxu1 %v1951_v21 }
 0x20d   :  { %2677 = vmatprep.subr.mxu0 %v2791_v47  ;;  %2730 = vmatprep.subr.mxu1 %v2791_v47 }
 0x20e   :  { %2678 = vmatpush3.msra.mxu0 %v1699_v22  ;;  %2731 = vmatpush3.msra.mxu1 %v1950_v23  ;;  %v28_v22 = vld [vmem:[%s3735_s1 + $0x4] ss:$0 sm:$0xff] }
 0x20f   :  { %2701 = vmatprep.subr.mxu0 %v2791_v47  ;;  %2732 = vmatprep.subr.mxu1 %v2791_v47 }
 0x210   :  { %2736 = vmatprep.mubr.msk.f32.mxu1 %vm2792_vm3, %v2791_v47  ;;  %2733 = vmatpush3.msra.mxu1 %v1949_v24  ;;  %v29_v24 = vld [vmem:[%s3735_s1 + $0x5] ss:$0 sm:$0xff] }
 0x211   :  { %2734 = vmatprep.subr.mxu1 %v2791_v47 }
 0x212   :  { %2735 = vmatpush3.msra.mxu1 %v1948_v25 }
 0x285   :  { %v705_v26 = vpop.f32.mrf.mxu0 }
 0x287   :  { %v949_v27 = vpop.f32.mrf.mxu1  ;;  %v2541_v28 = vpop.f32.mrf.mxu0 }
 0x289   :  { %v2574_v29 = vpop.f32.mrf.mxu1 }
 0x28e   :  { %v778_v30 = vpop.f32.mrf.mxu0 }
 0x28f   :  { %v1121_v31 = vpop.f32.mrf.mxu1  ;;  %v779_v40 = vadd.f32 %v778_v30, %v705_v26 }
 0x290   :  { %v2552_v32 = vpop.f32.mrf.mxu0 }
 0x291   :  { %v2596_v33 = vpop.f32.mrf.mxu1  ;;  %v1867_v32 = vld [vmem:[%s3737_s3 + $0xb8] sm:$0xff] }
 0x298   :  { %v863_v34 = vpop.f32.mrf.mxu0 }
 0x299   :  { %v1293_v35 = vpop.f32.mrf.mxu1  ;;  %v867_v43 = vadd.f32 %v863_v34, %v779_v40  ;;  %v1863_v40 = vld [vmem:[%s3737_s3 + $0x98] sm:$0xff] }
 0x29a   :  { %v2563_v36 = vpop.f32.mrf.mxu0 }
 0x29b   :  { %v2618_v37 = vpop.f32.mrf.mxu1  ;;  %v953_v44 = vadd.f32 %v949_v27, %v867_v43  ;;  %v1861_v43 = vld [vmem:[%s3737_s3 + $0x88] sm:$0xff] }
 0x29c   :  { %v1866_v37 = vld [vmem:[%s3737_s3 + $0xb0] sm:$0xff] }
 0x2a2   :  { %v1035_v38 = vpop.f32.mrf.mxu0 }
 0x2a3   :  { %v1465_v39 = vpop.f32.mrf.mxu1  ;;  %v1039_v45 = vadd.f32 %v1035_v38, %v953_v44  ;;  %v1865_v38 = vld [vmem:[%s3737_s3 + $0xa8] sm:$0xff] }
 0x2a4   :  { %v2585_v41 = vpop.f32.mrf.mxu0 }
 0x2a5   :  { %v2640_v42 = vpop.f32.mrf.mxu1  ;;  %v1125_v51 = vadd.f32 %v1121_v31, %v1039_v45  ;;  %v1862_v41 = vld [vmem:[%s3737_s3 + $0x90] sm:$0xff]  ;;  %v1860_v45 = vld [vmem:[%s3737_s3 + $0x80] sm:$0xff] }
 0x2ac   :  { %v1207_v46 = vpop.f32.mrf.mxu0 }
 0x2ad   :  { %v1637_v48 = vpop.f32.mrf.mxu1  ;;  %v1211_v52 = vadd.f32 %v1207_v46, %v1125_v51  ;;  %v2041_v51 = vld [vmem:[%s3737_s3 + $0x128] sm:$0xff] }
 0x2ae   :  { %v2607_v49 = vpop.f32.mrf.mxu0 }
 0x2af   :  { %v2662_v50 = vpop.f32.mrf.mxu1  ;;  %v1297_v54 = vadd.f32 %v1293_v35, %v1211_v52  ;;  %v2040_v52 = vld [vmem:[%s3737_s3 + $0x120] sm:$0xff] }
 0x2b0   :  { %v2042_v50 = vld [vmem:[%s3737_s3 + $0x130] sm:$0xff] }
 0x2b5   :  { %v1379_v53 = vpop.f32.mrf.mxu0 }
 0x2b6   :  { %v1383_v56 = vadd.f32 %v1379_v53, %v1297_v54  ;;  %v2039_v53 = vld [vmem:[%s3737_s3 + $0x118] sm:$0xff]  ;;  %v2031_v54 = vld [vmem:[#allocation4 + $0xa] sm:$0x3] }
 0x2b7   :  { %v2629_v55 = vpop.f32.mrf.mxu0 }
 0x2b8   :  { %v1469_v57 = vadd.f32 %v1465_v39, %v1383_v56  ;;  %v1864_v39 = vld [vmem:[%s3737_s3 + $0xa0] sm:$0xff]  ;;  %v2038_v55 = vld [vmem:[%s3737_s3 + $0x110] sm:$0xff]  ;;  %v2033_v56 = vrot.slane %v2031_v54, 6 }
 0x2bd   :  { %v1551_v58 = vpop.f32.mrf.mxu0 }
 0x2be   :  { %v1555_v59 = vadd.f32 %v1551_v58, %v1469_v57  ;;  %v2037_v57 = vld [vmem:[%s3737_s3 + $0x108] sm:$0xff]  ;;  %v2030_v58 = vld [vmem:[#allocation4 + $0x4] sm:$0x3] }
 0x2bf   :  { %v2651_v61 = vpop.f32.mrf.mxu0 }
 0x2c0   :  { %v1641_v62 = vadd.f32 %v1637_v48, %v1555_v59  ;;  %v2043_v48 = vld [vmem:[%s3737_s3 + $0x138] sm:$0xff]  ;;  %v2036_v59 = vld [vmem:[%s3737_s3 + $0x100] sm:$0xff] }
 0x2c2   :  { %v1642_v63 = vadd.f32 %v1641_v62, %v27_v60  ;;  %v2035_v60 = vsel %vm618_vm5, %v2030_v58, %v2033_v56  ;;  %v2372_v56 = vld [vmem:[%s3735_s1 + $0x7] ss:$8 sm:$0x3] }
 0x2c3   :  { %v1850_v61 = vpop.f32.mrf.mxu1 }
 0x2c4   :  { %v1644_v0 = vsel %vm1643_vm8, %v1642_v63, 0.0  ;;  %v1653_v1 = vmul.f32 %v1642_v63, %v1642_v63 }
 0x2c5   :  { %v1645_v2 = vrot.slane %v1644_v0, 4  ;;  %v2700_v62 = vpop.f32.mrf.mxu1 }
 0x2c6   :  { %v1654_v3 = vsel %vm1643_vm8, %v1653_v1, 0.0  ;;  %v2124_v1 = vld [vmem:[%s3738_s4 + $0x28] sm:$0xff] }
 0x2c7   :  { %v1646_v4 = vadd.f32 %v1645_v2, %v1644_v0  ;;  %v1655_v5 = vrot.slane %v1654_v3, 4  ;;  %v2125_v0 = vld [vmem:[%s3738_s4 + $0x30] sm:$0xff]  ;;  %v2122_v2 = vld [vmem:[%s3738_s4 + $0x18] sm:$0xff] }
 0x2c9   :  { %v1647_v6 = vrot.slane %v1646_v4, 2  ;;  %v1656_v7 = vadd.f32 %v1655_v5, %v1654_v3  ;;  %v2121_v3 = vld [vmem:[%s3738_s4 + $0x10] sm:$0xff]  ;;  %v2119_v5 = vld [vmem:[%s3738_s4] sm:$0xff] }
 0x2cb   :  { %v1648_v8 = vadd.f32 %v1647_v6, %v1646_v4  ;;  %v1657_v9 = vrot.slane %v1656_v7, 2  ;;  %v2120_v4 = vld [vmem:[%s3738_s4 + $0x8] sm:$0xff]  ;;  %v2285_v6 = vld [vmem:[%s3739_s5 + $0xf8] sm:$0xff] }
 0x2cd   :  { %v1649_v10 = vrot.slane %v1648_v8, 1  ;;  %v1658_v11 = vadd.f32 %v1657_v9, %v1656_v7 }
 0x2cf   :  { %v1650_v12 = vadd.f32 %v1649_v10, %v1648_v8  ;;  %v1659_v13 = vrot.slane %v1658_v11, 1 }
 0x2d1   :  { %v1652_v14 = vmul.f32 0.25, %v1650_v12  ;;  %v1660_v15 = vadd.f32 %v1659_v13, %v1658_v11 }
 0x2d3   :  { %v1661_v16 = vmul.f32 0.25, %v1660_v15  ;;  %v1662_v17 = vmul.f32 %v1652_v14, %v1652_v14  ;;  %v1664_v20 = vsub.f32 %v1642_v63, %v1652_v14  ;;  %v2126_v63 = vld [vmem:[%s3738_s4 + $0x38] sm:$0xff] }
 0x2d4   :  { %2165 = vmatprep.subr.mxu1 %v2126_v63 }
 0x2d5   :  { %v1663_v18 = vsub.f32 %v1661_v16, %v1662_v17  ;;  %v30_v16 = vld [vmem:[%s3735_s1 + $0x6] ss:$0 sm:$0xff] }
 0x2d7   :  { %v1665_v19 = vadd.f32 1e-05, %v1663_v18 }
 0x2d9   :  { %2766 = vrsqrt.f32 %v1665_v19 }
 0x2e6   :  { %v2767_v21 = vpop.eup %2766 }
 0x2e7   :  { %v1667_v23 = vmul.f32 %v2767_v21, %v1664_v20  ;;  %v2269_v21 = vld [vmem:[%s3739_s5 + $0x78] sm:$0xff] }
 0x2e9   :  { %v1668_v25 = vmul.f32 %v1667_v23, %v28_v22  ;;  %v2284_v22 = vld [vmem:[%s3739_s5 + $0xf0] sm:$0xff] }
 0x2ea   :  { %v2268_v23 = vld [vmem:[%s3739_s5 + $0x70] sm:$0xff] }
 0x2eb   :  { %v1669_v26 = vadd.f32 %v1668_v25, %v29_v24  ;;  %v2283_v24 = vld [vmem:[%s3739_s5 + $0xe8] sm:$0xff] }
 0x2ec   :  { %v2267_v25 = vld [vmem:[%s3739_s5 + $0x68] sm:$0xff] }
 0x2ed   :  { %v1670_v27 = vmax.f32 %v1669_v26, 0.0  ;;  %v2282_v26 = vld [vmem:[%s3739_s5 + $0xe0] sm:$0xff] }
 0x2ef   :  { %1673 = vst.msk [vmem:[#allocation4 + $0x2] sm:$0x3] %vm1671_vm6, %v1670_v27 }
 0x2f0   :  { %1677 = vst.msk [vmem:[#allocation4 + $0x6] sm:$0xc] %vm1676_vm9, %v1670_v27  ;;  %v2266_v27 = vld [vmem:[%s3739_s5 + $0x60] sm:$0xff] }
 0x2f6   :  { %v1693_v31 = vld [vmem:[#allocation4 + $0x1] sm:$0x3]  ;;  %v1942_v35 = vld [vmem:[#allocation4 + $0x3] sm:$0x3] }
 0x2f7   :  { %v1694_v28 = vld [vmem:[#allocation4 + $0x7] sm:$0x3]  ;;  %v1943_v30 = vld [vmem:[#allocation4 + $0x9] sm:$0x3]  ;;  %v1854_v46 = vld [vmem:[#allocation4 + $0x2] sm:$0x3] }
 0x2f8   :  { %v1696_v29 = vrot.slane %v1694_v28, 6  ;;  %v1945_v33 = vrot.slane %v1943_v30, 6  ;;  %v1855_v42 = vld [vmem:[#allocation4 + $0x8] sm:$0x3]  ;;  %v2281_v28 = vld [vmem:[%s3739_s5 + $0xd8] sm:$0xff]  ;;  %v2280_v30 = vld [vmem:[%s3739_s5 + $0xd0] sm:$0xff] }
 0x2f9   :  { %v1857_v44 = vrot.slane %v1855_v42, 6  ;;  %v2274_v42 = vld [vmem:[%s3739_s5 + $0xa0] sm:$0xff] }
 0x2fa   :  { %v1698_v34 = vsel %vm618_vm5, %v1693_v31, %v1696_v29  ;;  %v1947_v36 = vsel %vm618_vm5, %v1942_v35, %v1945_v33  ;;  %v2265_v29 = vld [vmem:[%s3739_s5 + $0x58] sm:$0xff]  ;;  %v2264_v31 = vld [vmem:[%s3739_s5 + $0x50] sm:$0xff]  ;;  %v2263_v33 = vld [vmem:[%s3739_s5 + $0x48] sm:$0xff] }
 0x2fb   :  { %2680 = vmatmul.mubr.msk.f32.vlgmr.msra.gmra.mxu0 %vm1707_vm7, %v1698_v34  ;;  %2737 = vmatmul.mubr.msk.f32.vlgmr.msra.gmra.mxu1 %vm1707_vm7, %v1947_v36  ;;  %v1859_v49 = vsel %vm618_vm5, %v1854_v46, %v1857_v44  ;;  %v2278_v34 = vld [vmem:[%s3739_s5 + $0xc0] sm:$0xff]  ;;  %v2277_v36 = vld [vmem:[%s3739_s5 + $0xb8] sm:$0xff]  ;;  %v2272_v46 = vld [vmem:[%s3739_s5 + $0x90] sm:$0xff] }
 0x2fc   :  { %2702 = vmatpush3.msra.mxu0 %v1867_v32  ;;  %2717 = vmatprep.mubr.msk.f32.mxu0 %vm2792_vm3, %v2791_v47  ;;  %v2279_v32 = vld [vmem:[%s3739_s5 + $0xc8] sm:$0xff]  ;;  %v2262_v35 = vld [vmem:[%s3739_s5 + $0x40] sm:$0xff]  ;;  %v2273_v44 = vld [vmem:[%s3739_s5 + $0x98] sm:$0xff] }
 0x2fd   :  { %2703 = vmatprep.subr.mxu0 %v2791_v47  ;;  %2205 = vmatprep.mubr.f32.mxu1 %v2791_v47 }
 0x2fe   :  { %2704 = vmatpush3.msra.mxu0 %v1866_v37  ;;  %2166 = vmatpush1.msra.mxu1 %v2125_v0  ;;  %v2261_v37 = vld [vmem:[%s3739_s5 + $0x38] sm:$0xff] }
 0x2ff   :  { %2705 = vmatprep.subr.mxu0 %v2791_v47  ;;  %2167 = vmatprep.subr.mxu1 %v2124_v1 }
 0x300   :  { %2706 = vmatpush3.msra.mxu0 %v1865_v38  ;;  %v2276_v38 = vld [vmem:[%s3739_s5 + $0xb0] sm:$0xff] }
 0x301   :  { %2707 = vmatprep.subr.mxu0 %v2791_v47 }
 0x302   :  { %2708 = vmatpush3.msra.mxu0 %v1864_v39  ;;  %v2260_v39 = vld [vmem:[%s3739_s5 + $0x30] sm:$0xff] }
 0x303   :  { %2709 = vmatprep.subr.mxu0 %v2791_v47 }
 0x304   :  { %2710 = vmatpush3.msra.mxu0 %v1863_v40  ;;  %v2275_v40 = vld [vmem:[%s3739_s5 + $0xa8] sm:$0xff] }
 0x305   :  { %2711 = vmatprep.subr.mxu0 %v2791_v47 }
 0x306   :  { %2712 = vmatpush3.msra.mxu0 %v1862_v41  ;;  %v2259_v41 = vld [vmem:[%s3739_s5 + $0x28] sm:$0xff] }
 0x307   :  { %2713 = vmatprep.subr.mxu0 %v2791_v47 }
 0x308   :  { %2714 = vmatpush3.msra.mxu0 %v1861_v43  ;;  %v2258_v43 = vld [vmem:[%s3739_s5 + $0x20] sm:$0xff] }
 0x309   :  { %2715 = vmatprep.subr.mxu0 %v2791_v47 }
 0x30a   :  { %2716 = vmatpush3.msra.mxu0 %v1860_v45  ;;  %v2257_v45 = vld [vmem:[%s3739_s5 + $0x18] sm:$0xff] }
 0x30b   :  { %2718 = vmatmul.mubr.msk.f32.vlgmr.msra.gmra.mxu0 %vm1707_vm7, %v1859_v49  ;;  %2739 = vmatprep.subr.mxu0 %v2791_v47  ;;  %v2271_v49 = vld [vmem:[%s3739_s5 + $0x88] sm:$0xff] }
 0x30c   :  { %2740 = vmatpush3.msra.mxu0 %v2043_v48  ;;  %2755 = vmatprep.mubr.msk.f32.mxu0 %vm2792_vm3, %v2791_v47  ;;  %v2256_v48 = vld [vmem:[%s3739_s5 + $0x10] sm:$0xff] }
 0x30d   :  { %2741 = vmatprep.subr.mxu0 %v2791_v47 }
 0x30e   :  { %2742 = vmatpush3.msra.mxu0 %v2042_v50  ;;  %v2255_v50 = vld [vmem:[%s3739_s5 + $0x8] sm:$0xff] }
 0x30f   :  { %2743 = vmatprep.subr.mxu0 %v2791_v47 }
 0x310   :  { %2744 = vmatpush3.msra.mxu0 %v2041_v51  ;;  %v2270_v51 = vld [vmem:[%s3739_s5 + $0x80] sm:$0xff] }
 0x311   :  { %2745 = vmatprep.subr.mxu0 %v2791_v47 }
 0x312   :  { %2746 = vmatpush3.msra.mxu0 %v2040_v52  ;;  %v2254_v52 = vld [vmem:[%s3739_s5] sm:$0xff] }
 0x313   :  { %2747 = vmatprep.subr.mxu0 %v2791_v47 }
 0x314   :  { %2748 = vmatpush3.msra.mxu0 %v2039_v53  ;;  %v2128_v53 = vlaneseq }
 0x315   :  { %2749 = vmatprep.subr.mxu0 %v2791_v47 }
 0x316   :  { %2750 = vmatpush3.msra.mxu0 %v2038_v55  ;;  %v2129_v54 = vshrl.u32 %v2128_v53, 7 }
 0x317   :  { %2751 = vmatprep.subr.mxu0 %v2791_v47 }
 0x318   :  { %2752 = vmatpush3.msra.mxu0 %v2037_v57  ;;  %v2130_v55 = vsub.s32 0, %v2129_v54  ;;  %v2134_v57 = vsub.s32 1, %v2129_v54 }
 0x319   :  { %2753 = vmatprep.subr.mxu0 %v2791_v47  ;;  %v2123_v47 = vld [vmem:[%s3738_s4 + $0x20] sm:$0xff] }
 0x31a   :  { %2754 = vmatpush3.msra.mxu0 %v2036_v59  ;;  %2168 = vmatpush1.msra.mxu1 %v2123_v47  ;;  %v2131_v58 = vrot.slane %v2372_v56, %v2130_v55  ;;  %v2135_v59 = vrot.slane %v2372_v56, %v2134_v57 }
 0x31b   :  { %2756 = vmatmul.mubr.msk.f32.vlgmr.msra.gmra.mxu0 %vm1707_vm7, %v2035_v60  ;;  %2169 = vmatprep.subr.mxu1 %v2122_v2 }
 0x31c   :  { %2170 = vmatpush1.msra.mxu1 %v2121_v3 }
 0x31d   :  { %2171 = vmatprep.subr.mxu1 %v2120_v4 }
 0x31e   :  { %2172 = vmatpush1.msra.mxu1 %v2119_v5 }
 0x31f   :  { %2496 = vmatprep.subr.mxu1 %v2285_v6 }
 0x3bb   :  { %v1777_v7 = vpop.f32.mrf.mxu0  ;;  %v2025_v8 = vpop.f32.mrf.mxu1 }
 0x3bc   :  { %v1851_v13 = vadd.f32 %v1850_v61, %v1777_v7 }
 0x3bd   :  { %v2681_v9 = vpop.f32.mrf.mxu0  ;;  %v2738_v10 = vpop.f32.mrf.mxu1 }
 0x3cb   :  { %v1937_v11 = vpop.f32.mrf.mxu0 }
 0x3cc   :  { %v1941_v14 = vadd.f32 %v1937_v11, %v1851_v13 }
 0x3cd   :  { %v2719_v12 = vpop.f32.mrf.mxu0 }
 0x3ce   :  { %v2029_v15 = vadd.f32 %v2025_v8, %v1941_v14 }
 0x3db   :  { %v2113_v17 = vpop.f32.mrf.mxu0 }
 0x3dc   :  { %v2117_v18 = vadd.f32 %v2113_v17, %v2029_v15 }
 0x3dd   :  { %v2757_v19 = vpop.f32.mrf.mxu0 }
 0x3de   :  { %v2118_v20 = vadd.f32 %v2117_v18, %v30_v16 }
 0x3e0   :  { %2390 = vmatmul.mubr.msk.f32.vlgmr.msra.gmra.mxu1 %vm567_vm4, %v2118_v20 }
 0x3e1   :  { %2497 = vmatpush3.msra.mxu1 %v2269_v21 }
 0x3e2   :  { %2498 = vmatprep.subr.mxu1 %v2284_v22 }
 0x3e3   :  { %2499 = vmatpush3.msra.mxu1 %v2268_v23 }
 0x3e4   :  { %2500 = vmatprep.subr.mxu1 %v2283_v24 }
 0x3e5   :  { %2501 = vmatpush3.msra.mxu1 %v2267_v25 }
 0x3e6   :  { %2502 = vmatprep.subr.mxu1 %v2282_v26 }
 0x3e7   :  { %2503 = vmatpush3.msra.mxu1 %v2266_v27 }
 0x3e8   :  { %2504 = vmatprep.subr.mxu1 %v2281_v28 }
 0x3e9   :  { %2505 = vmatpush3.msra.mxu1 %v2265_v29 }
 0x3ea   :  { %2506 = vmatprep.subr.mxu1 %v2280_v30 }
 0x3eb   :  { %2507 = vmatpush3.msra.mxu1 %v2264_v31 }
 0x3ec   :  { %2508 = vmatprep.subr.mxu1 %v2279_v32 }
 0x3ed   :  { %2509 = vmatpush3.msra.mxu1 %v2263_v33 }
 0x3ee   :  { %2510 = vmatprep.subr.mxu1 %v2278_v34 }
 0x3ef   :  { %2511 = vmatpush3.msra.mxu1 %v2262_v35 }
 0x3f0   :  { %2512 = vmatprep.subr.mxu1 %v2277_v36  ;;  %v33_v36 = vld [vmem:[%s3735_s1 + $0x10] ss:$0 sm:$0xff] }
 0x3f1   :  { %2513 = vmatpush3.msra.mxu1 %v2261_v37 }
 0x3f2   :  { %2514 = vmatprep.subr.mxu1 %v2276_v38 }
 0x3f3   :  { %2515 = vmatpush3.msra.mxu1 %v2260_v39 }
 0x3f4   :  { %2516 = vmatprep.subr.mxu1 %v2275_v40 }
 0x3f5   :  { %2517 = vmatpush3.msra.mxu1 %v2259_v41 }
 0x3f6   :  { %2518 = vmatprep.subr.mxu1 %v2274_v42 }
 0x3f7   :  { %2519 = vmatpush3.msra.mxu1 %v2258_v43 }
 0x3f8   :  { %2520 = vmatprep.subr.mxu1 %v2273_v44 }
 0x3f9   :  { %2521 = vmatpush3.msra.mxu1 %v2257_v45 }
 0x3fa   :  { %2522 = vmatprep.subr.mxu1 %v2272_v46 }
 0x3fb   :  { %2523 = vmatpush3.msra.mxu1 %v2256_v48 }
 0x3fc   :  { %2524 = vmatprep.subr.mxu1 %v2271_v49 }
 0x3fd   :  { %2525 = vmatpush3.msra.mxu1 %v2255_v50 }
 0x3fe   :  { %2526 = vmatprep.subr.mxu1 %v2270_v51 }
 0x3ff   :  { %2527 = vmatpush3.msra.mxu1 %v2254_v52 }
 0x4a0   :  { %v2207_v60 = vpop.f32.mrf.mxu1 }
 0x4a1   :  { %v2208_v61 = vadd.f32 %v2207_v60, %v2131_v58 }
 0x4a2   :  { %v2209_v62 = vpop.f32.mrf.mxu1 }
 0x4a3   :  { %v2212_v63 = vsel %vm618_vm5, %v2208_v61, 0.0  ;;  %v2231_v0 = vrot.slane %v2208_v61, 2  ;;  %v2210_v1 = vadd.f32 %v2209_v62, %v2135_v59 }
 0x4a4   :  { %v2213_v47 = vrot.slane %v2212_v63, 4 }
 0x4a5   :  { %v2235_v2 = vsel %vm618_vm5, %v2231_v0, 0.0  ;;  %v2219_v3 = vsel %vm618_vm5, %v2210_v1, 0.0  ;;  %v2232_v4 = vrot.slane %v2210_v1, 2 }
 0x4a6   :  { %v2214_v5 = vadd.f32 %v2213_v47, %v2212_v63  ;;  %v2236_v6 = vrot.slane %v2235_v2, 4  ;;  %v2220_v7 = vrot.slane %v2219_v3, 4 }
 0x4a7   :  { %v2242_v8 = vsel %vm618_vm5, %v2232_v4, 0.0 }
 0x4a8   :  { %v2215_v9 = vrot.slane %v2214_v5, 2  ;;  %v2237_v10 = vadd.f32 %v2236_v6, %v2235_v2  ;;  %v2221_v11 = vadd.f32 %v2220_v7, %v2219_v3  ;;  %v2243_v12 = vrot.slane %v2242_v8, 4 }
 0x4aa   :  { %v2216_v13 = vadd.f32 %v2215_v9, %v2214_v5  ;;  %v2238_v14 = vrot.slane %v2237_v10, 2  ;;  %v2222_v15 = vrot.slane %v2221_v11, 2  ;;  %v2244_v16 = vadd.f32 %v2243_v12, %v2242_v8 }
 0x4ac   :  { %v2239_v17 = vadd.f32 %v2238_v14, %v2237_v10  ;;  %v2223_v18 = vadd.f32 %v2222_v15, %v2221_v11  ;;  %v2245_v19 = vrot.slane %v2244_v16, 2  ;;  %v2217_v20 = vrot.slane %v2216_v13, 1 }
 0x4ae   :  { %v2240_v21 = vrot.slane %v2239_v17, 1  ;;  %v2224_v22 = vrot.slane %v2223_v18, 1  ;;  %v2246_v23 = vadd.f32 %v2245_v19, %v2244_v16  ;;  %v2218_v27 = vadd.f32 %v2217_v20, %v2216_v13 }
 0x4b0   :  { %v2225_v24 = vadd.f32 %v2224_v22, %v2223_v18  ;;  %v2247_v25 = vrot.slane %v2246_v23, 1  ;;  %v2241_v26 = vadd.f32 %v2240_v21, %v2239_v17  ;;  %v2227_v32 = vmul.f32 0.5, %v2218_v27 }
 0x4b2   :  { %v2248_v28 = vadd.f32 %v2247_v25, %v2246_v23  ;;  %v2249_v29 = vmul.f32 0.5, %v2241_v26  ;;  %v2228_v30 = vmul.f32 0.5, %v2225_v24 }
 0x4b4   :  { %v2250_v31 = vmul.f32 0.5, %v2248_v28  ;;  %v2252_v34 = vsel %vm2251_vm10, %v2227_v32, %v2249_v29 }
 0x4b6   :  { %v2253_v33 = vsel %vm2251_vm10, %v2228_v30, %v2250_v31 }
 0x4b7   :  { %2350 = vmatprep.mubr.f32.mxu1 %v2253_v33 }
 0x4b8   :  { %2351 = vmatmul.mubr.f32.vlgmr.msra.gmra.mxu1 %v2252_v34 }
 0x578   :  { %v2528_v35 = vpop.f32.mrf.mxu1 }
 0x57a   :  { %v2529_v37 = vpop.f32.mrf.mxu1 }
 0x57b   :  { %v2530_v38 = vadd.f32 %v2529_v37, %v2528_v35 }
 0x57d   :  { %v2353_v39 = vadd.f32 %v2530_v38, %v33_v36 }
 0x57f   :  { %2357 = vst.msk [vmem:[#allocation5] sm:$0x3] %vm2356_vm11, %v2353_v39 }
 0x580   :  { %2779 = shalt.err (!%p2776_p4)
}
 0x581   :  { %2367 = dma.vmem_to_hbm [thread:$0]  %s2365_s18, 32, %s3740_s6, [#allocation6]  }
 0x582   :  { %2788 = dma.done.wait [#allocation6], 32  }
 0x583   :  { %2789 = vsyncadd [#allocation6], 4294967264 }
 0x584   :  { %2371 = vsyncpa [#allocation6], 1 }

</bundles_post_ra>
